<compile_context>
chip_gen: v6e
topology: v6e:2x2x1
jax: 0.10.0
libtpu: 0.0.40
codegen_flags: <defaults>
</compile_context>

<pallas_src>
import functools

import numpy as np
import jax
import jax.numpy as jnp
from jax import lax
from jax.experimental import pallas as pl
from jax.experimental.pallas import tpu as pltpu


def _med3(a, b, c):
    return jnp.maximum(jnp.minimum(a, b), jnp.minimum(jnp.maximum(a, b), c))


def _augment_kernel(planes_ref, x_ref, o_ref, *, img_w):
    """One lane-group of G images: block (C, H, L) with L = G * img_w lanes.

    planes_ref: int32 (7, L) per-lane parameter planes
      [col-in-image, erase_y0, erase_y1, erase_x0, erase_x1, flip, blur].
    """
    C, H, L = x_ref.shape
    cdt = jnp.float32

    x = x_ref[...].astype(cdt)                                # (C, H, L)

    col_in = planes_ref[0:1, :]                                # (1, L) int32
    e_y0 = planes_ref[1:2, :]
    e_y1 = planes_ref[2:3, :]
    e_x0 = planes_ref[3:4, :]
    e_x1 = planes_ref[4:5, :]
    flip = planes_ref[5:6, :]
    blur = planes_ref[6:7, :]

    # --- RandomErasing: zero the per-image box (empty box when not applied) -
    rows_hl = lax.broadcasted_iota(jnp.int32, (H, L), 0)       # (H, L)
    in_box = ((rows_hl >= e_y0) & (rows_hl < e_y1) &
              (col_in >= e_x0) & (col_in < e_x1))              # (H, L)
    x = jnp.where(in_box[None], 0.0, x)                        # (C, H, L)

    # --- RandomHorizontalFlip: exact within-image lane reverse + select -----
    # reverse(c) = c XOR (W-1): log2(W) butterfly stages of +-2^k lane rolls.
    flipped = x
    k = 1
    while k < img_w:
        hi_bit = ((col_in & k) > 0)[None]                      # (1, 1, L)
        fwd = pltpu.roll(flipped, L - k, 2)                    # value at c + k
        bwd = pltpu.roll(flipped, k, 2)                        # value at c - k
        flipped = jnp.where(hi_bit, bwd, fwd)
        k *= 2
    y = jnp.where((flip > 0)[None], flipped, x)

    # --- RandomMedianBlur 3x3: separable median-of-9, zero padding ----------
    rows_chl = lax.broadcasted_iota(jnp.int32, (C, H, L), 1)
    up = jnp.where(rows_chl == 0, 0.0, pltpu.roll(y, 1, 1))          # row r-1
    dn = jnp.where(rows_chl == H - 1, 0.0, pltpu.roll(y, H - 1, 1))  # row r+1

    t_lo = jnp.minimum(up, dn)
    t_hi = jnp.maximum(up, dn)
    lo = jnp.minimum(t_lo, y)                                  # vertical minima
    mid = jnp.maximum(t_lo, jnp.minimum(t_hi, y))              # vertical medians
    hi = jnp.maximum(t_hi, y)                                  # vertical maxima

    left_edge = (col_in == 0)[None]                            # (1, 1, L)
    right_edge = (col_in == img_w - 1)[None]

    def from_left(p):   # value at column c-1 inside the image, 0 at c == 0
        return jnp.where(left_edge, 0.0, pltpu.roll(p, 1, 2))

    def from_right(p):  # value at column c+1 inside the image, 0 at c == W-1
        return jnp.where(right_edge, 0.0, pltpu.roll(p, L - 1, 2))

    lo_max = jnp.maximum(jnp.maximum(from_left(lo), lo), from_right(lo))
    mid_med = _med3(from_left(mid), mid, from_right(mid))
    hi_min = jnp.minimum(jnp.minimum(from_left(hi), hi), from_right(hi))
    blurred = _med3(lo_max, mid_med, hi_min)

    o_ref[...] = jnp.where((blur > 0)[None], blurred, y).astype(o_ref.dtype)


def _pick_group_size(n, w):
    """Images per lane-group: largest divisor G of n with G*w a multiple of
    128 (lane-dense blocks), capped at 1024 lanes per block.  Falls back to
    the whole batch (block == full lane extent, always a legal BlockSpec)."""
    best = None
    for g in range(1, n + 1):
        if n % g == 0 and (g * w) % 128 == 0 and g * w <= 1024:
            best = g
    return best if best is not None else n


def data_augmentation(x, params):
    """x: float (N, C, H, W); params: int32 (6, N) = [y0, x0, eh, ew, flip, blur]."""
    N, C, H, W = x.shape
    assert W & (W - 1) == 0, "butterfly flip needs a power-of-two image width"
    G = _pick_group_size(N, W)
    GW = G * W
    NG = N // G

    # Pack images along the lane axis: (N, C, H, W) -> (C, H, N*W).
    xp = jnp.transpose(x, (1, 2, 0, 3)).reshape(C, H, N * W)

    # Per-lane int32 parameter planes (7, N*W):
    # [col-in-image, y0, y0+eh, x0, x0+ew, flip, blur].
    y0, x0, eh, ew, flip, blur = (params[i] for i in range(6))
    rep = lambda v: jnp.repeat(v.astype(jnp.int32), W)
    col_in = jnp.tile(jnp.arange(W, dtype=jnp.int32), N)
    planes = jnp.stack(
        [col_in, rep(y0), rep(y0 + eh), rep(x0), rep(x0 + ew),
         rep(flip), rep(blur)], axis=0)

    out_packed = pl.pallas_call(
        functools.partial(_augment_kernel, img_w=W),
        out_shape=jax.ShapeDtypeStruct((C, H, N * W), x.dtype),
        grid_spec=pltpu.PrefetchScalarGridSpec(
            num_scalar_prefetch=0,
            grid=(NG,),
            in_specs=[
                pl.BlockSpec((7, GW), lambda g: (0, g)),         # param planes
                pl.BlockSpec((C, H, GW), lambda g: (0, 0, g)),   # packed images
            ],
            out_specs=pl.BlockSpec((C, H, GW), lambda g: (0, 0, g)),
        ),
        compiler_params=pltpu.CompilerParams(
            dimension_semantics=("parallel",)),
    )(planes, xp)

    # Unpack (C, H, N*W) -> (N, C, H, W).
    return jnp.transpose(out_packed.reshape(C, H, N, W), (2, 0, 1, 3))


def sample_augmentation_params(key, x_shape):
    """Per-image random parameters (kornia defaults), deterministic via JAX PRNG.

    Returns int32 (6, N): [y0, x0, eh, ew, flip, blur]; the erase flag is
    folded into the box size (eh = ew = 0 when the erase is not applied).
    """
    N, _, H, W = x_shape
    ks = jax.random.split(key, 7)
    erase = jax.random.uniform(ks[0], (N,)) < 0.5
    scale = jax.random.uniform(ks[1], (N,), minval=0.02, maxval=0.33)
    aspect = jnp.exp(jax.random.uniform(ks[2], (N,),
                                        minval=jnp.log(0.3), maxval=jnp.log(3.3)))
    area = scale * H * W
    eh = jnp.clip(jnp.round(jnp.sqrt(area / aspect)), 1, H).astype(jnp.int32)
    ew = jnp.clip(jnp.round(jnp.sqrt(area * aspect)), 1, W).astype(jnp.int32)
    y0 = jnp.floor(jax.random.uniform(ks[3], (N,)) *
                   (H - eh + 1).astype(jnp.float32)).astype(jnp.int32)
    x0 = jnp.floor(jax.random.uniform(ks[4], (N,)) *
                   (W - ew + 1).astype(jnp.float32)).astype(jnp.int32)
    flip = (jax.random.uniform(ks[5], (N,)) < 0.5).astype(jnp.int32)
    blur = (jax.random.uniform(ks[6], (N,)) < 0.5).astype(jnp.int32)
    eh = jnp.where(erase, eh, 0)
    ew = jnp.where(erase, ew, 0)
    return jnp.stack([y0, x0, eh, ew, flip, blur], axis=0).astype(jnp.int32)


def _reference(x, params):
    x = np.asarray(x, np.float32)
    params = np.asarray(params)
    N, C, H, W = x.shape
    out = np.zeros_like(x)
    for n in range(N):
        y0, x0, eh, ew, ff, bf = (int(v) for v in params[:, n])
        img = x[n].copy()
        img[:, y0:y0 + eh, x0:x0 + ew] = 0.0
        if ff:
            img = img[:, :, ::-1]
        if bf:
            pad = np.pad(img, ((0, 0), (1, 1), (1, 1)))
            patches = np.stack([pad[:, dy:dy + H, dx:dx + W]
                                for dy in range(3) for dx in range(3)], axis=0)
            img = np.median(patches, axis=0)
        out[n] = img
    return out


if __name__ == "__main__":
    key = jax.random.PRNGKey(0)
    kx, kp = jax.random.split(key)
    x = jax.random.uniform(kx, (2, 4, 16, 16), dtype=jnp.float32)  # NCHW

    params = sample_augmentation_params(kp, x.shape)
    out = jax.block_until_ready(jax.jit(data_augmentation)(x, params))

    ref = _reference(x, params)
    np.testing.assert_allclose(np.asarray(out), ref, rtol=1e-5, atol=1e-5)
    print("KERNEL_OK")
</pallas_src>

<mosaic_0001>
module attributes {stable_mosaic.version = 11 : i64} {
  func.func @_augment_kernel(%arg0: i32, %arg1: memref<7x32xi32, #tpu.memory_space<vmem>>, %arg2: memref<4x16x32xf32, #tpu.memory_space<vmem>>, %arg3: memref<4x16x32xf32, #tpu.memory_space<vmem>>) attributes {dimension_semantics = [#tpu.dimension_semantics<parallel>], iteration_bounds = array<i64: 1>, scalar_prefetch = 0 : i64, scratch_operands = 0 : i64, tpu.core_type = #tpu.core_type<tc>, window_params = [{transform_indices = @transform_0, window_bounds = array<i64: 7, 32>}, {transform_indices = @transform_1, window_bounds = array<i64: 4, 16, 32>}, {transform_indices = @transform_2, window_bounds = array<i64: 4, 16, 32>}]} {
    %c0 = arith.constant 0 : index
    %c0_0 = arith.constant 0 : index
    %c0_1 = arith.constant 0 : index
    %0 = vector.load %arg2[%c0, %c0_0, %c0_1] : memref<4x16x32xf32, #tpu.memory_space<vmem>>, vector<4x16x32xf32>
    %c0_2 = arith.constant 0 : index
    %c0_3 = arith.constant 0 : index
    %1 = vector.load %arg1[%c0_2, %c0_3] : memref<7x32xi32, #tpu.memory_space<vmem>>, vector<1x32xi32>
    %c1 = arith.constant 1 : index
    %c0_4 = arith.constant 0 : index
    %2 = vector.load %arg1[%c1, %c0_4] : memref<7x32xi32, #tpu.memory_space<vmem>>, vector<1x32xi32>
    %c2 = arith.constant 2 : index
    %c0_5 = arith.constant 0 : index
    %3 = vector.load %arg1[%c2, %c0_5] : memref<7x32xi32, #tpu.memory_space<vmem>>, vector<1x32xi32>
    %c3 = arith.constant 3 : index
    %c0_6 = arith.constant 0 : index
    %4 = vector.load %arg1[%c3, %c0_6] : memref<7x32xi32, #tpu.memory_space<vmem>>, vector<1x32xi32>
    %c4 = arith.constant 4 : index
    %c0_7 = arith.constant 0 : index
    %5 = vector.load %arg1[%c4, %c0_7] : memref<7x32xi32, #tpu.memory_space<vmem>>, vector<1x32xi32>
    %c5 = arith.constant 5 : index
    %c0_8 = arith.constant 0 : index
    %6 = vector.load %arg1[%c5, %c0_8] : memref<7x32xi32, #tpu.memory_space<vmem>>, vector<1x32xi32>
    %c6 = arith.constant 6 : index
    %c0_9 = arith.constant 0 : index
    %7 = vector.load %arg1[%c6, %c0_9] : memref<7x32xi32, #tpu.memory_space<vmem>>, vector<1x32xi32>
    %8 = tpu.iota {dimensions = array<i32: 0>} : vector<16x32xi32>
    %9 = vector.broadcast %2 : vector<1x32xi32> to vector<16x32xi32>
    %10 = arith.cmpi sge, %8, %9 : vector<16x32xi32>
    %11 = vector.broadcast %3 : vector<1x32xi32> to vector<16x32xi32>
    %12 = arith.cmpi slt, %8, %11 : vector<16x32xi32>
    %13 = arith.andi %10, %12 : vector<16x32xi1>
    %14 = arith.cmpi sge, %1, %4 : vector<1x32xi32>
    %15 = vector.broadcast %14 : vector<1x32xi1> to vector<16x32xi1>
    %16 = arith.andi %13, %15 : vector<16x32xi1>
    %17 = arith.cmpi slt, %1, %5 : vector<1x32xi32>
    %18 = vector.broadcast %17 : vector<1x32xi1> to vector<16x32xi1>
    %19 = arith.andi %16, %18 : vector<16x32xi1>
    %20 = vector.shape_cast %19 : vector<16x32xi1> to vector<1x16x32xi1>
    %cst = arith.constant 0.000000e+00 : f32
    %21 = vector.shape_cast %20 : vector<1x16x32xi1> to vector<1x16x32xi1>
    %22 = vector.broadcast %21 : vector<1x16x32xi1> to vector<4x16x32xi1>
    %23 = vector.broadcast %cst : f32 to vector<4x16x32xf32>
    %24 = arith.select %22, %23, %0 : vector<4x16x32xi1>, vector<4x16x32xf32>
    %c1_i32 = arith.constant 1 : i32
    %25 = vector.broadcast %c1_i32 : i32 to vector<1x32xi32>
    %26 = arith.andi %1, %25 : vector<1x32xi32>
    %c0_i32 = arith.constant 0 : i32
    %27 = vector.broadcast %c0_i32 : i32 to vector<1x32xi32>
    %28 = arith.cmpi sgt, %26, %27 : vector<1x32xi32>
    %29 = vector.shape_cast %28 : vector<1x32xi1> to vector<1x1x32xi1>
    %c31_i32 = arith.constant 31 : i32
    %30 = tpu.dynamic_rotate %24 by %c31_i32 dim 2 : vector<4x16x32xf32>, i32 -> vector<4x16x32xf32>
    %c1_i32_10 = arith.constant 1 : i32
    %31 = tpu.dynamic_rotate %24 by %c1_i32_10 dim 2 : vector<4x16x32xf32>, i32 -> vector<4x16x32xf32>
    %32 = vector.shape_cast %29 : vector<1x1x32xi1> to vector<1x1x32xi1>
    %33 = vector.broadcast %32 : vector<1x1x32xi1> to vector<4x16x32xi1>
    %34 = arith.select %33, %31, %30 : vector<4x16x32xi1>, vector<4x16x32xf32>
    %c2_i32 = arith.constant 2 : i32
    %35 = vector.broadcast %c2_i32 : i32 to vector<1x32xi32>
    %36 = arith.andi %1, %35 : vector<1x32xi32>
    %c0_i32_11 = arith.constant 0 : i32
    %37 = vector.broadcast %c0_i32_11 : i32 to vector<1x32xi32>
    %38 = arith.cmpi sgt, %36, %37 : vector<1x32xi32>
    %39 = vector.shape_cast %38 : vector<1x32xi1> to vector<1x1x32xi1>
    %c30_i32 = arith.constant 30 : i32
    %40 = tpu.dynamic_rotate %34 by %c30_i32 dim 2 : vector<4x16x32xf32>, i32 -> vector<4x16x32xf32>
    %c2_i32_12 = arith.constant 2 : i32
    %41 = tpu.dynamic_rotate %34 by %c2_i32_12 dim 2 : vector<4x16x32xf32>, i32 -> vector<4x16x32xf32>
    %42 = vector.shape_cast %39 : vector<1x1x32xi1> to vector<1x1x32xi1>
    %43 = vector.broadcast %42 : vector<1x1x32xi1> to vector<4x16x32xi1>
    %44 = arith.select %43, %41, %40 : vector<4x16x32xi1>, vector<4x16x32xf32>
    %c4_i32 = arith.constant 4 : i32
    %45 = vector.broadcast %c4_i32 : i32 to vector<1x32xi32>
    %46 = arith.andi %1, %45 : vector<1x32xi32>
    %c0_i32_13 = arith.constant 0 : i32
    %47 = vector.broadcast %c0_i32_13 : i32 to vector<1x32xi32>
    %48 = arith.cmpi sgt, %46, %47 : vector<1x32xi32>
    %49 = vector.shape_cast %48 : vector<1x32xi1> to vector<1x1x32xi1>
    %c28_i32 = arith.constant 28 : i32
    %50 = tpu.dynamic_rotate %44 by %c28_i32 dim 2 : vector<4x16x32xf32>, i32 -> vector<4x16x32xf32>
    %c4_i32_14 = arith.constant 4 : i32
    %51 = tpu.dynamic_rotate %44 by %c4_i32_14 dim 2 : vector<4x16x32xf32>, i32 -> vector<4x16x32xf32>
    %52 = vector.shape_cast %49 : vector<1x1x32xi1> to vector<1x1x32xi1>
    %53 = vector.broadcast %52 : vector<1x1x32xi1> to vector<4x16x32xi1>
    %54 = arith.select %53, %51, %50 : vector<4x16x32xi1>, vector<4x16x32xf32>
    %c8_i32 = arith.constant 8 : i32
    %55 = vector.broadcast %c8_i32 : i32 to vector<1x32xi32>
    %56 = arith.andi %1, %55 : vector<1x32xi32>
    %c0_i32_15 = arith.constant 0 : i32
    %57 = vector.broadcast %c0_i32_15 : i32 to vector<1x32xi32>
    %58 = arith.cmpi sgt, %56, %57 : vector<1x32xi32>
    %59 = vector.shape_cast %58 : vector<1x32xi1> to vector<1x1x32xi1>
    %c24_i32 = arith.constant 24 : i32
    %60 = tpu.dynamic_rotate %54 by %c24_i32 dim 2 : vector<4x16x32xf32>, i32 -> vector<4x16x32xf32>
    %c8_i32_16 = arith.constant 8 : i32
    %61 = tpu.dynamic_rotate %54 by %c8_i32_16 dim 2 : vector<4x16x32xf32>, i32 -> vector<4x16x32xf32>
    %62 = vector.shape_cast %59 : vector<1x1x32xi1> to vector<1x1x32xi1>
    %63 = vector.broadcast %62 : vector<1x1x32xi1> to vector<4x16x32xi1>
    %64 = arith.select %63, %61, %60 : vector<4x16x32xi1>, vector<4x16x32xf32>
    %c0_i32_17 = arith.constant 0 : i32
    %65 = vector.broadcast %c0_i32_17 : i32 to vector<1x32xi32>
    %66 = arith.cmpi sgt, %6, %65 : vector<1x32xi32>
    %67 = vector.shape_cast %66 : vector<1x32xi1> to vector<1x1x32xi1>
    %68 = vector.shape_cast %67 : vector<1x1x32xi1> to vector<1x1x32xi1>
    %69 = vector.broadcast %68 : vector<1x1x32xi1> to vector<4x16x32xi1>
    %70 = arith.select %69, %64, %24 : vector<4x16x32xi1>, vector<4x16x32xf32>
    %71 = tpu.iota {dimensions = array<i32: 1>} : vector<4x16x32xi32>
    %c0_i32_18 = arith.constant 0 : i32
    %72 = vector.broadcast %c0_i32_18 : i32 to vector<4x16x32xi32>
    %73 = arith.cmpi eq, %71, %72 : vector<4x16x32xi32>
    %c1_i32_19 = arith.constant 1 : i32
    %74 = tpu.dynamic_rotate %70 by %c1_i32_19 dim 1 : vector<4x16x32xf32>, i32 -> vector<4x16x32xf32>
    %cst_20 = arith.constant 0.000000e+00 : f32
    %75 = vector.broadcast %cst_20 : f32 to vector<4x16x32xf32>
    %76 = arith.select %73, %75, %74 : vector<4x16x32xi1>, vector<4x16x32xf32>
    %c15_i32 = arith.constant 15 : i32
    %77 = vector.broadcast %c15_i32 : i32 to vector<4x16x32xi32>
    %78 = arith.cmpi eq, %71, %77 : vector<4x16x32xi32>
    %c15_i32_21 = arith.constant 15 : i32
    %79 = tpu.dynamic_rotate %70 by %c15_i32_21 dim 1 : vector<4x16x32xf32>, i32 -> vector<4x16x32xf32>
    %cst_22 = arith.constant 0.000000e+00 : f32
    %80 = vector.broadcast %cst_22 : f32 to vector<4x16x32xf32>
    %81 = arith.select %78, %80, %79 : vector<4x16x32xi1>, vector<4x16x32xf32>
    %82 = arith.minimumf %76, %81 : vector<4x16x32xf32>
    %83 = arith.maximumf %76, %81 : vector<4x16x32xf32>
    %84 = arith.minimumf %82, %70 : vector<4x16x32xf32>
    %85 = arith.minimumf %83, %70 : vector<4x16x32xf32>
    %86 = arith.maximumf %82, %85 : vector<4x16x32xf32>
    %87 = arith.maximumf %83, %70 : vector<4x16x32xf32>
    %c0_i32_23 = arith.constant 0 : i32
    %88 = vector.broadcast %c0_i32_23 : i32 to vector<1x32xi32>
    %89 = arith.cmpi eq, %1, %88 : vector<1x32xi32>
    %90 = vector.shape_cast %89 : vector<1x32xi1> to vector<1x1x32xi1>
    %c15_i32_24 = arith.constant 15 : i32
    %91 = vector.broadcast %c15_i32_24 : i32 to vector<1x32xi32>
    %92 = arith.cmpi eq, %1, %91 : vector<1x32xi32>
    %93 = vector.shape_cast %92 : vector<1x32xi1> to vector<1x1x32xi1>
    %c1_i32_25 = arith.constant 1 : i32
    %94 = tpu.dynamic_rotate %84 by %c1_i32_25 dim 2 : vector<4x16x32xf32>, i32 -> vector<4x16x32xf32>
    %cst_26 = arith.constant 0.000000e+00 : f32
    %95 = vector.shape_cast %90 : vector<1x1x32xi1> to vector<1x1x32xi1>
    %96 = vector.broadcast %95 : vector<1x1x32xi1> to vector<4x16x32xi1>
    %97 = vector.broadcast %cst_26 : f32 to vector<4x16x32xf32>
    %98 = arith.select %96, %97, %94 : vector<4x16x32xi1>, vector<4x16x32xf32>
    %99 = arith.maximumf %98, %84 : vector<4x16x32xf32>
    %c31_i32_27 = arith.constant 31 : i32
    %100 = tpu.dynamic_rotate %84 by %c31_i32_27 dim 2 : vector<4x16x32xf32>, i32 -> vector<4x16x32xf32>
    %cst_28 = arith.constant 0.000000e+00 : f32
    %101 = vector.shape_cast %93 : vector<1x1x32xi1> to vector<1x1x32xi1>
    %102 = vector.broadcast %101 : vector<1x1x32xi1> to vector<4x16x32xi1>
    %103 = vector.broadcast %cst_28 : f32 to vector<4x16x32xf32>
    %104 = arith.select %102, %103, %100 : vector<4x16x32xi1>, vector<4x16x32xf32>
    %105 = arith.maximumf %99, %104 : vector<4x16x32xf32>
    %c1_i32_29 = arith.constant 1 : i32
    %106 = tpu.dynamic_rotate %86 by %c1_i32_29 dim 2 : vector<4x16x32xf32>, i32 -> vector<4x16x32xf32>
    %cst_30 = arith.constant 0.000000e+00 : f32
    %107 = vector.shape_cast %90 : vector<1x1x32xi1> to vector<1x1x32xi1>
    %108 = vector.broadcast %107 : vector<1x1x32xi1> to vector<4x16x32xi1>
    %109 = vector.broadcast %cst_30 : f32 to vector<4x16x32xf32>
    %110 = arith.select %108, %109, %106 : vector<4x16x32xi1>, vector<4x16x32xf32>
    %c31_i32_31 = arith.constant 31 : i32
    %111 = tpu.dynamic_rotate %86 by %c31_i32_31 dim 2 : vector<4x16x32xf32>, i32 -> vector<4x16x32xf32>
    %cst_32 = arith.constant 0.000000e+00 : f32
    %112 = vector.shape_cast %93 : vector<1x1x32xi1> to vector<1x1x32xi1>
    %113 = vector.broadcast %112 : vector<1x1x32xi1> to vector<4x16x32xi1>
    %114 = vector.broadcast %cst_32 : f32 to vector<4x16x32xf32>
    %115 = arith.select %113, %114, %111 : vector<4x16x32xi1>, vector<4x16x32xf32>
    %116 = arith.minimumf %110, %86 : vector<4x16x32xf32>
    %117 = arith.maximumf %110, %86 : vector<4x16x32xf32>
    %118 = arith.minimumf %117, %115 : vector<4x16x32xf32>
    %119 = arith.maximumf %116, %118 : vector<4x16x32xf32>
    %c1_i32_33 = arith.constant 1 : i32
    %120 = tpu.dynamic_rotate %87 by %c1_i32_33 dim 2 : vector<4x16x32xf32>, i32 -> vector<4x16x32xf32>
    %cst_34 = arith.constant 0.000000e+00 : f32
    %121 = vector.shape_cast %90 : vector<1x1x32xi1> to vector<1x1x32xi1>
    %122 = vector.broadcast %121 : vector<1x1x32xi1> to vector<4x16x32xi1>
    %123 = vector.broadcast %cst_34 : f32 to vector<4x16x32xf32>
    %124 = arith.select %122, %123, %120 : vector<4x16x32xi1>, vector<4x16x32xf32>
    %125 = arith.minimumf %124, %87 : vector<4x16x32xf32>
    %c31_i32_35 = arith.constant 31 : i32
    %126 = tpu.dynamic_rotate %87 by %c31_i32_35 dim 2 : vector<4x16x32xf32>, i32 -> vector<4x16x32xf32>
    %cst_36 = arith.constant 0.000000e+00 : f32
    %127 = vector.shape_cast %93 : vector<1x1x32xi1> to vector<1x1x32xi1>
    %128 = vector.broadcast %127 : vector<1x1x32xi1> to vector<4x16x32xi1>
    %129 = vector.broadcast %cst_36 : f32 to vector<4x16x32xf32>
    %130 = arith.select %128, %129, %126 : vector<4x16x32xi1>, vector<4x16x32xf32>
    %131 = arith.minimumf %125, %130 : vector<4x16x32xf32>
    %132 = arith.minimumf %105, %119 : vector<4x16x32xf32>
    %133 = arith.maximumf %105, %119 : vector<4x16x32xf32>
    %134 = arith.minimumf %133, %131 : vector<4x16x32xf32>
    %135 = arith.maximumf %132, %134 : vector<4x16x32xf32>
    %c0_i32_37 = arith.constant 0 : i32
    %136 = vector.broadcast %c0_i32_37 : i32 to vector<1x32xi32>
    %137 = arith.cmpi sgt, %7, %136 : vector<1x32xi32>
    %138 = vector.shape_cast %137 : vector<1x32xi1> to vector<1x1x32xi1>
    %139 = vector.shape_cast %138 : vector<1x1x32xi1> to vector<1x1x32xi1>
    %140 = vector.broadcast %139 : vector<1x1x32xi1> to vector<4x16x32xi1>
    %141 = arith.select %140, %135, %70 : vector<4x16x32xi1>, vector<4x16x32xf32>
    %c0_38 = arith.constant 0 : index
    %c0_39 = arith.constant 0 : index
    %c0_40 = arith.constant 0 : index
    %142 = vector.load %arg3[%c0_38, %c0_39, %c0_40] : memref<4x16x32xf32, #tpu.memory_space<vmem>>, vector<4x16x32xf32>
    tpu.vector_store %arg3[%c0_38, %c0_39, %c0_40], %141 {strides = array<i32>} : memref<4x16x32xf32, #tpu.memory_space<vmem>>, vector<4x16x32xf32>,
    return
  }
  func.func @transform_0(%arg0: i32) -> (i32, i32) {
    %c0_i32 = arith.constant 0 : i32
    %c0_i32_0 = arith.constant 0 : i32
    return %c0_i32, %arg0 : i32, i32
  }
  func.func @transform_1(%arg0: i32) -> (i32, i32, i32) {
    %c0_i32 = arith.constant 0 : i32
    %c0_i32_0 = arith.constant 0 : i32
    %c0_i32_1 = arith.constant 0 : i32
    return %c0_i32, %c0_i32_0, %arg0 : i32, i32, i32
  }
  func.func @transform_2(%arg0: i32) -> (i32, i32, i32) {
    %c0_i32 = arith.constant 0 : i32
    %c0_i32_0 = arith.constant 0 : i32
    %c0_i32_1 = arith.constant 0 : i32
    return %c0_i32, %c0_i32_0, %arg0 : i32, i32, i32
  }
}

</mosaic_0001>

<bundles_post_ra>
// kernel: tile.9
= control target key start
LH: loop header
LB: loop body
LE: loop exit
PB: predicated region body
PF: predicated region fallthrough
CT: control target
= control target key end

     0   :  { %vm8_vm0 = vcmask 130048   ;;  %vm14_vm1 = vcmask 261248   ;;  %s42_s0 = inlined_call_operand.vmem [shape: s32[2,16], index: 0, kind: input, shape index: {}]   ;;  %s43_s1 = inlined_call_operand.vmem [shape: s32[1,32], index: 1, kind: output, shape index: {}]  }
   0x1   :  { %v5_v0 = vld [vmem:[%s42_s0] sm:$0x3]  ;;  %s25_s0 = smov 16  }
   0x2   :  { %6 = vst [vmem:[#allocation1] sm:$0x3] %v5_v0 }
   0x9   :  { %v11_v1 = vld [vmem:[#allocation1 + $0x1] sm:$0x1]   ;;  %v7_v2 = vld [vmem:[#allocation1] sm:$0x1]  }
   0xa   :  { %12 = vrot.lane.b32.xlu0 %v11_v1, %s25_s0  ;;  %9 = vst.msk [vmem:[#allocation0] sm:$0x1] %vm8_vm0, %v7_v2  }
  0x7c   :  { %v13_v3 = vpop.permute.xlu0 %12  }
  0x7d   :  { %15 = vst.msk [vmem:[#allocation0] sm:$0x1] %vm14_vm1, %v13_v3  }
  0x84   :  { %v20_v4 = vld [vmem:[#allocation0] sm:$0x1] }
  0x85   :  { %23 = vst [vmem:[%s43_s1] sm:$0x1] %v20_v4 }

// kernel: data_augmentation.1
= control target key start
LH: loop header
LB: loop body
LE: loop exit
PB: predicated region body
PF: predicated region fallthrough
CT: control target
= control target key end

     0   :  { %v26_v0 = vlaneseq  ;;  %v1182_v7 = vmov 0   ;;  %s1183_s27 = smov 32   ;;  %vm75_vm14 = vcmask 1047808   ;;  %s1185_s8 = smov 127   ;;  %s2297_s0 = inlined_call_operand.vmem [shape: s32[7,32], index: 0, kind: input, shape index: {}]   ;;  %s2298_s1 = inlined_call_operand.vmem [shape: f32[4,16,32], index: 1, kind: input, shape index: {}]   ;;  %s2299_s2 = inlined_call_operand.vmem [shape: f32[4,16,32], index: 2, kind: output, shape index: {}]  }
   0x1   :  { %v1210_v1 = vld [vmem:[%s2297_s0] sm:$0x1]  ;;  %v1169_v2 = vld [vmem:[%s2297_s0 + $0x1] ss:$0 sm:$0xff]  ;;  %v1170_v3 = vld [vmem:[%s2297_s0 + $0x2] ss:$0 sm:$0xff] }
   0x2   :  { %v22_v4 = vld [vmem:[%s2297_s0 + $0x3] sm:$0x1]  ;;  %v23_v5 = vld [vmem:[%s2297_s0 + $0x4] sm:$0x1]  ;;  %v1224_v6 = vshrl.u32 %v26_v0, 7  ;;  %v13_v16 = vld [vmem:[%s2298_s1 + $0x10] sm:$0xff] }
   0x3   :  { %vm43_vm0 = vcmp.ge.s32.totalorder %v1210_v1, %v22_v4  ;;  %vm52_vm1 = vcmp.lt.s32.totalorder %v1210_v1, %v23_v5  ;;  %v11_v14 = vld [vmem:[%s2298_s1] sm:$0xff]  ;;  %v12_v18 = vld [vmem:[%s2298_s1 + $0x8] sm:$0xff]  ;;  %v14_v19 = vld [vmem:[%s2298_s1 + $0x18] sm:$0xff]  ;;  %s1186_s9 = smov 98   ;;  %s1187_s10 = smov 126   ;;  %v194_v15 = vand.u32 2, %v1210_v1 }
   0x4   :  { %v44_v8 = vsel %vm43_vm0, 1, %v1182_v7  ;;  %v53_v9 = vsel %vm52_vm1, 1, %v1182_v7  ;;  %vm33_vm2 = vcmp.ge.s32.totalorder %v1224_v6, %v1169_v2  ;;  %vm39_vm3 = vcmp.lt.s32.totalorder %v1224_v6, %v1170_v3  ;;  %v15_v24 = vld [vmem:[%s2298_s1 + $0x20] sm:$0xff]  ;;  %v16_v25 = vld [vmem:[%s2298_s1 + $0x28] sm:$0xff]  ;;  %v17_v28 = vld [vmem:[%s2298_s1 + $0x30] sm:$0xff]  ;;  %s1188_s11 = smov 100  }
   0x5   :  { %v1233_v10 = vsub.s32 0, %v1224_v6  ;;  %v1236_v11 = vadd.s32 8, %v1224_v6  ;;  %vm41_vm4 = vmand %vm33_vm2, %vm39_vm3  ;;  %v18_v29 = vld [vmem:[%s2298_s1 + $0x38] sm:$0xff]  ;;  %s1184_s1 = smov 97   ;;  %vm195_vm1 = vcmp.gt.s32.totalorder %v194_v15, 0  ;;  %s1189_s12 = smov 124  }
   0x6   :  { %s1190_s13 = smov 104   ;;  %s1191_s14 = smov 120  }
   0x7   :  { %v48_v12 = vrot.slane %v44_v8, %v1233_v10  ;;  %v57_v13 = vrot.slane %v53_v9, %v1233_v10  ;;  %vm34_vm5 = vcmp.ge.s32.totalorder %v1236_v11, %v1169_v2  ;;  %vm40_vm6 = vcmp.lt.s32.totalorder %v1236_v11, %v1170_v3 }
   0x8   :  { %vm42_vm9 = vmand %vm34_vm5, %vm40_vm6  ;;  %v73_v2 = vand.u32 1, %v1210_v1 }
   0x9   :  { %vm1245_vm7 = vcmp.eq.s32.totalorder %v48_v12, 1  ;;  %vm58_vm8 = vcmp.eq.s32.totalorder %v57_v13, 1 }
   0xa   :  { %vm50_vm10 = vmand %vm41_vm4, %vm1245_vm7  ;;  %vm74_vm15 = vcmp.gt.s32.totalorder %v73_v2, 0 }
   0xb   :  { %vm1254_vm11 = vmand %vm50_vm10, %vm58_vm8  ;;  %v124_v5 = vsel %vm74_vm15, 1, %v1182_v7  ;;  %vm569_vm10 = vcmp.eq.s32.totalorder %v1224_v6, 0 }
   0xc   :  { %v1266_v20 = vsel %vm1254_vm11, 0.0, %v11_v14  ;;  %v1270_v21 = vsel %vm1254_vm11, 0.0, %v13_v16  ;;  %vm51_vm12 = vmand %vm42_vm9, %vm1245_vm7  ;;  %v1294_v26 = vsel %vm1254_vm11, 0.0, %v15_v24  ;;  %v1310_v30 = vsel %vm1254_vm11, 0.0, %v17_v28 }
   0xd   :  { %76 = vrot.lane.b32.xlu0 %v1266_v20, %s1183_s27  ;;  %82 = vrot.lane.b32.xlu1 %v1270_v21, %s1183_s27  ;;  %vm60_vm13 = vmand %vm51_vm12, %vm58_vm8  ;;  %v128_v12 = vrot.slane %v124_v5, %v1233_v10  ;;  %vm579_vm9 = vcmp.lt.s32.totalorder %v1224_v6, 1  ;;  %vm606_vm11 = vcmp.lt.s32.totalorder %v1224_v6, 7  ;;  %vm597_vm12 = vcmp.eq.s32.totalorder %v1236_v11, 15 }
   0xe   :  { %v1278_v22 = vsel %vm60_vm13, 0.0, %v12_v18  ;;  %v1280_v23 = vsel %vm60_vm13, 0.0, %v14_v19  ;;  %v1296_v27 = vsel %vm60_vm13, 0.0, %v16_v25  ;;  %v1312_v31 = vsel %vm60_vm13, 0.0, %v18_v29 }
   0xf   :  { %vm1377_vm0 = vcmp.eq.s32.totalorder %v128_v12, 1 }
  0x11   :  { %79 = vrot.lane.b32.xlu0 %v1278_v22, %s1183_s27  ;;  %85 = vrot.lane.b32.xlu1 %v1280_v23, %s1183_s27 }
  0x15   :  { %88 = vrot.lane.b32.xlu0 %v1294_v26, %s1183_s27  ;;  %91 = vrot.lane.b32.xlu1 %v1296_v27, %s1183_s27 }
  0x19   :  { %94 = vrot.lane.b32.xlu0 %v1310_v30, %s1183_s27  ;;  %97 = vrot.lane.b32.xlu1 %v1312_v31, %s1183_s27 }
  0x7f   :  { %v77_v32 = vpop.permute.xlu0 %76  ;;  %v83_v33 = vpop.permute.xlu1 %82 }
  0x80   :  { %v78_v34 = vsel %vm75_vm14, %v77_v32, %v1266_v20  ;;  %v84_v35 = vsel %vm75_vm14, %v83_v33, %v1270_v21 }
  0x81   :  { %100 = vrot.lane.b32.xlu0 %v78_v34, %s1183_s27 }
  0x83   :  { %v80_v36 = vpop.permute.xlu0 %79  ;;  %v86_v37 = vpop.permute.xlu1 %85 }
  0x84   :  { %v81_v38 = vsel %vm75_vm14, %v80_v36, %v1278_v22  ;;  %v87_v39 = vsel %vm75_vm14, %v86_v37, %v1280_v23 }
  0x85   :  { %104 = vrot.lane.b32.xlu0 %v84_v35, %s1183_s27  ;;  %102 = vrot.lane.b32.xlu1 %v81_v38, %s1183_s27 }
  0x87   :  { %v89_v40 = vpop.permute.xlu0 %88  ;;  %v92_v41 = vpop.permute.xlu1 %91 }
  0x88   :  { %v90_v42 = vsel %vm75_vm14, %v89_v40, %v1294_v26  ;;  %v93_v43 = vsel %vm75_vm14, %v92_v41, %v1296_v27 }
  0x89   :  { %106 = vrot.lane.b32.xlu1 %v87_v39, %s1183_s27  ;;  %108 = vrot.lane.b32.xlu0 %v90_v42, %s1183_s27 }
  0x8b   :  { %v95_v44 = vpop.permute.xlu0 %94  ;;  %v98_v45 = vpop.permute.xlu1 %97 }
  0x8c   :  { %v96_v46 = vsel %vm75_vm14, %v95_v44, %v1310_v30  ;;  %v99_v47 = vsel %vm75_vm14, %v98_v45, %v1312_v31 }
  0x8d   :  { %110 = vrot.lane.b32.xlu1 %v93_v43, %s1183_s27  ;;  %112 = vrot.lane.b32.xlu0 %v96_v46, %s1183_s27 }
  0x91   :  { %114 = vrot.lane.b32.xlu1 %v99_v47, %s1183_s27 }
  0xf3   :  { %v101_v48 = vpop.permute.xlu0 %100 }
  0xf4   :  { %v116_v49 = vsel %vm75_vm14, %v101_v48, %v1266_v20 }
  0xf5   :  { %138 = vrot.lane.b32.xlu0 %v116_v49, %s1184_s1 }
  0xf7   :  { %v103_v50 = vpop.permute.xlu1 %102  ;;  %v105_v51 = vpop.permute.xlu0 %104 }
  0xf8   :  { %v117_v52 = vsel %vm75_vm14, %v103_v50, %v1278_v22  ;;  %v118_v53 = vsel %vm75_vm14, %v105_v51, %v1270_v21 }
  0xf9   :  { %140 = vrot.lane.b32.xlu1 %v117_v52, %s1184_s1  ;;  %142 = vrot.lane.b32.xlu0 %v118_v53, %s1184_s1 }
  0xfb   :  { %v107_v54 = vpop.permute.xlu1 %106  ;;  %v109_v55 = vpop.permute.xlu0 %108 }
  0xfc   :  { %v119_v56 = vsel %vm75_vm14, %v107_v54, %v1280_v23  ;;  %v120_v57 = vsel %vm75_vm14, %v109_v55, %v1294_v26 }
  0xfd   :  { %144 = vrot.lane.b32.xlu1 %v119_v56, %s1184_s1  ;;  %146 = vrot.lane.b32.xlu0 %v120_v57, %s1184_s1 }
  0xff   :  { %v111_v58 = vpop.permute.xlu1 %110  ;;  %v113_v59 = vpop.permute.xlu0 %112 }
 0x100   :  { %v121_v60 = vsel %vm75_vm14, %v111_v58, %v1296_v27  ;;  %v122_v61 = vsel %vm75_vm14, %v113_v59, %v1310_v30 }
 0x101   :  { %148 = vrot.lane.b32.xlu1 %v121_v60, %s1184_s1  ;;  %150 = vrot.lane.b32.xlu0 %v122_v61, %s1184_s1 }
 0x103   :  { %v115_v62 = vpop.permute.xlu1 %114 }
 0x104   :  { %v123_v63 = vsel %vm75_vm14, %v115_v62, %v1312_v31 }
 0x105   :  { %152 = vrot.lane.b32.xlu1 %v123_v63, %s1184_s1  ;;  %162 = vrot.lane.b32.xlu0 %v116_v49, %s1185_s8 }
 0x109   :  { %164 = vrot.lane.b32.xlu1 %v117_v52, %s1185_s8  ;;  %166 = vrot.lane.b32.xlu0 %v118_v53, %s1185_s8 }
 0x10d   :  { %168 = vrot.lane.b32.xlu1 %v119_v56, %s1185_s8  ;;  %170 = vrot.lane.b32.xlu0 %v120_v57, %s1185_s8 }
 0x111   :  { %172 = vrot.lane.b32.xlu1 %v121_v60, %s1185_s8  ;;  %174 = vrot.lane.b32.xlu0 %v122_v61, %s1185_s8 }
 0x115   :  { %176 = vrot.lane.b32.xlu1 %v123_v63, %s1185_s8 }
 0x167   :  { %v139_v0 = vpop.permute.xlu0 %138 }
 0x16b   :  { %v141_v3 = vpop.permute.xlu1 %140  ;;  %v143_v4 = vpop.permute.xlu0 %142 }
 0x16f   :  { %v145_v8 = vpop.permute.xlu1 %144  ;;  %v147_v9 = vpop.permute.xlu0 %146 }
 0x173   :  { %v149_v13 = vpop.permute.xlu1 %148  ;;  %v151_v14 = vpop.permute.xlu0 %150 }
 0x177   :  { %v153_v16 = vpop.permute.xlu1 %152  ;;  %v163_v17 = vpop.permute.xlu0 %162 }
 0x178   :  { %v186_v18 = vsel %vm1377_vm0, %v139_v0, %v163_v17 }
 0x179   :  { %196 = vrot.lane.b32.xlu0 %v186_v18, %s1183_s27 }
 0x17b   :  { %v165_v19 = vpop.permute.xlu1 %164  ;;  %v167_v24 = vpop.permute.xlu0 %166 }
 0x17c   :  { %v187_v25 = vsel %vm1377_vm0, %v141_v3, %v165_v19  ;;  %v188_v28 = vsel %vm1377_vm0, %v143_v4, %v167_v24 }
 0x17d   :  { %199 = vrot.lane.b32.xlu1 %v187_v25, %s1183_s27  ;;  %202 = vrot.lane.b32.xlu0 %v188_v28, %s1183_s27 }
 0x17f   :  { %v169_v29 = vpop.permute.xlu1 %168  ;;  %v171_v32 = vpop.permute.xlu0 %170 }
 0x180   :  { %v189_v33 = vsel %vm1377_vm0, %v145_v8, %v169_v29  ;;  %v190_v34 = vsel %vm1377_vm0, %v147_v9, %v171_v32  ;;  %v314_v32 = vand.u32 4, %v1210_v1 }
 0x181   :  { %205 = vrot.lane.b32.xlu1 %v189_v33, %s1183_s27  ;;  %208 = vrot.lane.b32.xlu0 %v190_v34, %s1183_s27 }
 0x182   :  { %vm315_vm3 = vcmp.gt.s32.totalorder %v314_v32, 0 }
 0x183   :  { %v173_v35 = vpop.permute.xlu1 %172  ;;  %v175_v36 = vpop.permute.xlu0 %174 }
 0x184   :  { %v191_v37 = vsel %vm1377_vm0, %v149_v13, %v173_v35  ;;  %v192_v38 = vsel %vm1377_vm0, %v151_v14, %v175_v36 }
 0x185   :  { %211 = vrot.lane.b32.xlu1 %v191_v37, %s1183_s27  ;;  %214 = vrot.lane.b32.xlu0 %v192_v38, %s1183_s27 }
 0x187   :  { %v177_v39 = vpop.permute.xlu1 %176 }
 0x188   :  { %v193_v40 = vsel %vm1377_vm0, %v153_v16, %v177_v39 }
 0x189   :  { %217 = vrot.lane.b32.xlu1 %v193_v40, %s1183_s27 }
 0x1eb   :  { %v197_v41 = vpop.permute.xlu0 %196 }
 0x1ec   :  { %v198_v42 = vsel %vm75_vm14, %v197_v41, %v186_v18 }
 0x1ed   :  { %220 = vrot.lane.b32.xlu0 %v198_v42, %s1183_s27 }
 0x1ef   :  { %v200_v43 = vpop.permute.xlu1 %199  ;;  %v203_v44 = vpop.permute.xlu0 %202 }
 0x1f0   :  { %v201_v45 = vsel %vm75_vm14, %v200_v43, %v187_v25  ;;  %v204_v46 = vsel %vm75_vm14, %v203_v44, %v188_v28 }
 0x1f1   :  { %222 = vrot.lane.b32.xlu1 %v201_v45, %s1183_s27  ;;  %224 = vrot.lane.b32.xlu0 %v204_v46, %s1183_s27 }
 0x1f3   :  { %v206_v47 = vpop.permute.xlu1 %205  ;;  %v209_v48 = vpop.permute.xlu0 %208 }
 0x1f4   :  { %v207_v49 = vsel %vm75_vm14, %v206_v47, %v189_v33  ;;  %v210_v50 = vsel %vm75_vm14, %v209_v48, %v190_v34 }
 0x1f5   :  { %226 = vrot.lane.b32.xlu1 %v207_v49, %s1183_s27  ;;  %228 = vrot.lane.b32.xlu0 %v210_v50, %s1183_s27 }
 0x1f7   :  { %v212_v51 = vpop.permute.xlu1 %211  ;;  %v215_v52 = vpop.permute.xlu0 %214 }
 0x1f8   :  { %v213_v53 = vsel %vm75_vm14, %v212_v51, %v191_v37  ;;  %v216_v54 = vsel %vm75_vm14, %v215_v52, %v192_v38 }
 0x1f9   :  { %230 = vrot.lane.b32.xlu1 %v213_v53, %s1183_s27  ;;  %232 = vrot.lane.b32.xlu0 %v216_v54, %s1183_s27 }
 0x1fb   :  { %v218_v55 = vpop.permute.xlu1 %217 }
 0x1fc   :  { %v219_v56 = vsel %vm75_vm14, %v218_v55, %v193_v40 }
 0x1fd   :  { %234 = vrot.lane.b32.xlu1 %v219_v56, %s1183_s27 }
 0x25f   :  { %v221_v57 = vpop.permute.xlu0 %220 }
 0x260   :  { %v236_v58 = vsel %vm75_vm14, %v221_v57, %v186_v18  ;;  %v244_v18 = vsel %vm195_vm1, 1, %v1182_v7 }
 0x261   :  { %258 = vrot.lane.b32.xlu0 %v236_v58, %s1186_s9 }
 0x263   :  { %v223_v59 = vpop.permute.xlu1 %222  ;;  %v225_v60 = vpop.permute.xlu0 %224 }
 0x264   :  { %v237_v61 = vsel %vm75_vm14, %v223_v59, %v187_v25  ;;  %v238_v62 = vsel %vm75_vm14, %v225_v60, %v188_v28  ;;  %v248_v25 = vrot.slane %v244_v18, %v1233_v10 }
 0x265   :  { %260 = vrot.lane.b32.xlu1 %v237_v61, %s1186_s9  ;;  %262 = vrot.lane.b32.xlu0 %v238_v62, %s1186_s9 }
 0x266   :  { %vm1432_vm2 = vcmp.eq.s32.totalorder %v248_v25, 1 }
 0x267   :  { %v227_v63 = vpop.permute.xlu1 %226  ;;  %v229_v0 = vpop.permute.xlu0 %228 }
 0x268   :  { %v239_v2 = vsel %vm75_vm14, %v227_v63, %v189_v33  ;;  %v240_v3 = vsel %vm75_vm14, %v229_v0, %v190_v34 }
 0x269   :  { %264 = vrot.lane.b32.xlu1 %v239_v2, %s1186_s9  ;;  %266 = vrot.lane.b32.xlu0 %v240_v3, %s1186_s9 }
 0x26b   :  { %v231_v4 = vpop.permute.xlu1 %230  ;;  %v233_v5 = vpop.permute.xlu0 %232 }
 0x26c   :  { %v241_v8 = vsel %vm75_vm14, %v231_v4, %v191_v37  ;;  %v242_v9 = vsel %vm75_vm14, %v233_v5, %v192_v38 }
 0x26d   :  { %268 = vrot.lane.b32.xlu1 %v241_v8, %s1186_s9  ;;  %270 = vrot.lane.b32.xlu0 %v242_v9, %s1186_s9 }
 0x26f   :  { %v235_v12 = vpop.permute.xlu1 %234 }
 0x270   :  { %v243_v13 = vsel %vm75_vm14, %v235_v12, %v193_v40 }
 0x271   :  { %272 = vrot.lane.b32.xlu1 %v243_v13, %s1186_s9  ;;  %282 = vrot.lane.b32.xlu0 %v236_v58, %s1187_s10 }
 0x275   :  { %284 = vrot.lane.b32.xlu1 %v237_v61, %s1187_s10  ;;  %286 = vrot.lane.b32.xlu0 %v238_v62, %s1187_s10 }
 0x279   :  { %288 = vrot.lane.b32.xlu1 %v239_v2, %s1187_s10  ;;  %290 = vrot.lane.b32.xlu0 %v240_v3, %s1187_s10 }
 0x27d   :  { %292 = vrot.lane.b32.xlu1 %v241_v8, %s1187_s10  ;;  %294 = vrot.lane.b32.xlu0 %v242_v9, %s1187_s10 }
 0x281   :  { %296 = vrot.lane.b32.xlu1 %v243_v13, %s1187_s10 }
 0x2d3   :  { %v259_v14 = vpop.permute.xlu0 %258 }
 0x2d7   :  { %v261_v16 = vpop.permute.xlu1 %260  ;;  %v263_v17 = vpop.permute.xlu0 %262 }
 0x2db   :  { %v265_v19 = vpop.permute.xlu1 %264  ;;  %v267_v24 = vpop.permute.xlu0 %266 }
 0x2df   :  { %v269_v28 = vpop.permute.xlu1 %268  ;;  %v271_v29 = vpop.permute.xlu0 %270 }
 0x2e3   :  { %v273_v33 = vpop.permute.xlu1 %272  ;;  %v283_v34 = vpop.permute.xlu0 %282 }
 0x2e4   :  { %v306_v35 = vsel %vm1432_vm2, %v259_v14, %v283_v34 }
 0x2e5   :  { %316 = vrot.lane.b32.xlu0 %v306_v35, %s1183_s27 }
 0x2e7   :  { %v285_v36 = vpop.permute.xlu1 %284  ;;  %v287_v37 = vpop.permute.xlu0 %286 }
 0x2e8   :  { %v307_v38 = vsel %vm1432_vm2, %v261_v16, %v285_v36  ;;  %v308_v39 = vsel %vm1432_vm2, %v263_v17, %v287_v37 }
 0x2e9   :  { %319 = vrot.lane.b32.xlu1 %v307_v38, %s1183_s27  ;;  %322 = vrot.lane.b32.xlu0 %v308_v39, %s1183_s27 }
 0x2eb   :  { %v289_v40 = vpop.permute.xlu1 %288  ;;  %v291_v41 = vpop.permute.xlu0 %290 }
 0x2ec   :  { %v309_v42 = vsel %vm1432_vm2, %v265_v19, %v289_v40  ;;  %v310_v43 = vsel %vm1432_vm2, %v267_v24, %v291_v41  ;;  %v434_v41 = vand.u32 8, %v1210_v1 }
 0x2ed   :  { %325 = vrot.lane.b32.xlu1 %v309_v42, %s1183_s27  ;;  %328 = vrot.lane.b32.xlu0 %v310_v43, %s1183_s27 }
 0x2ee   :  { %vm435_vm5 = vcmp.gt.s32.totalorder %v434_v41, 0 }
 0x2ef   :  { %v293_v44 = vpop.permute.xlu1 %292  ;;  %v295_v45 = vpop.permute.xlu0 %294 }
 0x2f0   :  { %v311_v46 = vsel %vm1432_vm2, %v269_v28, %v293_v44  ;;  %v312_v47 = vsel %vm1432_vm2, %v271_v29, %v295_v45 }
 0x2f1   :  { %331 = vrot.lane.b32.xlu1 %v311_v46, %s1183_s27  ;;  %334 = vrot.lane.b32.xlu0 %v312_v47, %s1183_s27 }
 0x2f3   :  { %v297_v48 = vpop.permute.xlu1 %296 }
 0x2f4   :  { %v313_v49 = vsel %vm1432_vm2, %v273_v33, %v297_v48 }
 0x2f5   :  { %337 = vrot.lane.b32.xlu1 %v313_v49, %s1183_s27 }
 0x357   :  { %v317_v50 = vpop.permute.xlu0 %316 }
 0x358   :  { %v318_v51 = vsel %vm75_vm14, %v317_v50, %v306_v35 }
 0x359   :  { %340 = vrot.lane.b32.xlu0 %v318_v51, %s1183_s27 }
 0x35b   :  { %v320_v52 = vpop.permute.xlu1 %319  ;;  %v323_v53 = vpop.permute.xlu0 %322 }
 0x35c   :  { %v321_v54 = vsel %vm75_vm14, %v320_v52, %v307_v38  ;;  %v324_v55 = vsel %vm75_vm14, %v323_v53, %v308_v39 }
 0x35d   :  { %342 = vrot.lane.b32.xlu1 %v321_v54, %s1183_s27  ;;  %344 = vrot.lane.b32.xlu0 %v324_v55, %s1183_s27 }
 0x35f   :  { %v326_v56 = vpop.permute.xlu1 %325  ;;  %v329_v57 = vpop.permute.xlu0 %328 }
 0x360   :  { %v327_v58 = vsel %vm75_vm14, %v326_v56, %v309_v42  ;;  %v330_v59 = vsel %vm75_vm14, %v329_v57, %v310_v43 }
 0x361   :  { %346 = vrot.lane.b32.xlu1 %v327_v58, %s1183_s27  ;;  %348 = vrot.lane.b32.xlu0 %v330_v59, %s1183_s27 }
 0x363   :  { %v332_v60 = vpop.permute.xlu1 %331  ;;  %v335_v61 = vpop.permute.xlu0 %334 }
 0x364   :  { %v333_v62 = vsel %vm75_vm14, %v332_v60, %v311_v46  ;;  %v336_v63 = vsel %vm75_vm14, %v335_v61, %v312_v47 }
 0x365   :  { %350 = vrot.lane.b32.xlu1 %v333_v62, %s1183_s27  ;;  %352 = vrot.lane.b32.xlu0 %v336_v63, %s1183_s27 }
 0x367   :  { %v338_v0 = vpop.permute.xlu1 %337 }
 0x368   :  { %v339_v2 = vsel %vm75_vm14, %v338_v0, %v313_v49 }
 0x369   :  { %354 = vrot.lane.b32.xlu1 %v339_v2, %s1183_s27 }
 0x3cb   :  { %v341_v3 = vpop.permute.xlu0 %340 }
 0x3cc   :  { %v356_v4 = vsel %vm75_vm14, %v341_v3, %v306_v35  ;;  %v364_v35 = vsel %vm315_vm3, 1, %v1182_v7  ;;  %vm1156_vm3 = vcmask 261120  }
 0x3cd   :  { %378 = vrot.lane.b32.xlu0 %v356_v4, %s1188_s11 }
 0x3cf   :  { %v343_v5 = vpop.permute.xlu1 %342  ;;  %v345_v8 = vpop.permute.xlu0 %344 }
 0x3d0   :  { %v357_v9 = vsel %vm75_vm14, %v343_v5, %v307_v38  ;;  %v358_v12 = vsel %vm75_vm14, %v345_v8, %v308_v39  ;;  %v368_v38 = vrot.slane %v364_v35, %v1233_v10 }
 0x3d1   :  { %380 = vrot.lane.b32.xlu1 %v357_v9, %s1188_s11  ;;  %382 = vrot.lane.b32.xlu0 %v358_v12, %s1188_s11 }
 0x3d2   :  { %vm1487_vm4 = vcmp.eq.s32.totalorder %v368_v38, 1 }
 0x3d3   :  { %v347_v13 = vpop.permute.xlu1 %346  ;;  %v349_v14 = vpop.permute.xlu0 %348 }
 0x3d4   :  { %v359_v15 = vsel %vm75_vm14, %v347_v13, %v309_v42  ;;  %v360_v16 = vsel %vm75_vm14, %v349_v14, %v310_v43 }
 0x3d5   :  { %384 = vrot.lane.b32.xlu1 %v359_v15, %s1188_s11  ;;  %386 = vrot.lane.b32.xlu0 %v360_v16, %s1188_s11 }
 0x3d7   :  { %v351_v17 = vpop.permute.xlu1 %350  ;;  %v353_v18 = vpop.permute.xlu0 %352 }
 0x3d8   :  { %v361_v19 = vsel %vm75_vm14, %v351_v17, %v311_v46  ;;  %v362_v24 = vsel %vm75_vm14, %v353_v18, %v312_v47 }
 0x3d9   :  { %388 = vrot.lane.b32.xlu1 %v361_v19, %s1188_s11  ;;  %390 = vrot.lane.b32.xlu0 %v362_v24, %s1188_s11 }
 0x3db   :  { %v355_v25 = vpop.permute.xlu1 %354 }
 0x3dc   :  { %v363_v28 = vsel %vm75_vm14, %v355_v25, %v313_v49 }
 0x3dd   :  { %392 = vrot.lane.b32.xlu1 %v363_v28, %s1188_s11  ;;  %402 = vrot.lane.b32.xlu0 %v356_v4, %s1189_s12 }
 0x3e1   :  { %404 = vrot.lane.b32.xlu1 %v357_v9, %s1189_s12  ;;  %406 = vrot.lane.b32.xlu0 %v358_v12, %s1189_s12 }
 0x3e5   :  { %408 = vrot.lane.b32.xlu1 %v359_v15, %s1189_s12  ;;  %410 = vrot.lane.b32.xlu0 %v360_v16, %s1189_s12 }
 0x3e9   :  { %412 = vrot.lane.b32.xlu1 %v361_v19, %s1189_s12  ;;  %414 = vrot.lane.b32.xlu0 %v362_v24, %s1189_s12 }
 0x3ed   :  { %416 = vrot.lane.b32.xlu1 %v363_v28, %s1189_s12 }
 0x43f   :  { %v379_v29 = vpop.permute.xlu0 %378 }
 0x443   :  { %v381_v33 = vpop.permute.xlu1 %380  ;;  %v383_v34 = vpop.permute.xlu0 %382 }
 0x447   :  { %v385_v36 = vpop.permute.xlu1 %384  ;;  %v387_v37 = vpop.permute.xlu0 %386 }
 0x44b   :  { %v389_v39 = vpop.permute.xlu1 %388  ;;  %v391_v40 = vpop.permute.xlu0 %390 }
 0x44f   :  { %v393_v42 = vpop.permute.xlu1 %392  ;;  %v403_v43 = vpop.permute.xlu0 %402 }
 0x450   :  { %v426_v44 = vsel %vm1487_vm4, %v379_v29, %v403_v43 }
 0x451   :  { %436 = vrot.lane.b32.xlu0 %v426_v44, %s1183_s27 }
 0x453   :  { %v405_v45 = vpop.permute.xlu1 %404  ;;  %v407_v46 = vpop.permute.xlu0 %406 }
 0x454   :  { %v428_v47 = vsel %vm1487_vm4, %v383_v34, %v407_v46  ;;  %v427_v48 = vsel %vm1487_vm4, %v381_v33, %v405_v45  ;;  %v484_v45 = vsel %vm435_vm5, 1, %v1182_v7 }
 0x455   :  { %439 = vrot.lane.b32.xlu1 %v427_v48, %s1183_s27  ;;  %442 = vrot.lane.b32.xlu0 %v428_v47, %s1183_s27 }
 0x457   :  { %v409_v49 = vpop.permute.xlu1 %408  ;;  %v411_v50 = vpop.permute.xlu0 %410 }
 0x458   :  { %v429_v51 = vsel %vm1487_vm4, %v385_v36, %v409_v49  ;;  %v430_v52 = vsel %vm1487_vm4, %v387_v37, %v411_v50  ;;  %v488_v49 = vrot.slane %v484_v45, %v1233_v10 }
 0x459   :  { %445 = vrot.lane.b32.xlu1 %v429_v51, %s1183_s27  ;;  %448 = vrot.lane.b32.xlu0 %v430_v52, %s1183_s27 }
 0x45a   :  { %vm1547_vm7 = vcmp.eq.s32.totalorder %v488_v49, 1 }
 0x45b   :  { %v413_v53 = vpop.permute.xlu1 %412  ;;  %v415_v54 = vpop.permute.xlu0 %414 }
 0x45c   :  { %v431_v55 = vsel %vm1487_vm4, %v389_v39, %v413_v53  ;;  %v432_v56 = vsel %vm1487_vm4, %v391_v40, %v415_v54 }
 0x45d   :  { %451 = vrot.lane.b32.xlu1 %v431_v55, %s1183_s27  ;;  %454 = vrot.lane.b32.xlu0 %v432_v56, %s1183_s27 }
 0x45f   :  { %v417_v57 = vpop.permute.xlu1 %416 }
 0x460   :  { %v433_v58 = vsel %vm1487_vm4, %v393_v42, %v417_v57  ;;  %v24_v42 = vld [vmem:[%s2297_s0 + $0x5] sm:$0x1] }
 0x461   :  { %457 = vrot.lane.b32.xlu1 %v433_v58, %s1183_s27  ;;  %vm554_vm6 = vcmp.gt.s32.totalorder %v24_v42, 0 }
 0x4c3   :  { %v437_v59 = vpop.permute.xlu0 %436 }
 0x4c4   :  { %v438_v60 = vsel %vm75_vm14, %v437_v59, %v426_v44 }
 0x4c5   :  { %460 = vrot.lane.b32.xlu0 %v438_v60, %s1183_s27 }
 0x4c7   :  { %v440_v61 = vpop.permute.xlu1 %439  ;;  %v443_v62 = vpop.permute.xlu0 %442 }
 0x4c8   :  { %v441_v63 = vsel %vm75_vm14, %v440_v61, %v427_v48  ;;  %v444_v0 = vsel %vm75_vm14, %v443_v62, %v428_v47 }
 0x4c9   :  { %462 = vrot.lane.b32.xlu1 %v441_v63, %s1183_s27  ;;  %464 = vrot.lane.b32.xlu0 %v444_v0, %s1183_s27 }
 0x4cb   :  { %v446_v2 = vpop.permute.xlu1 %445  ;;  %v449_v3 = vpop.permute.xlu0 %448 }
 0x4cc   :  { %v447_v4 = vsel %vm75_vm14, %v446_v2, %v429_v51  ;;  %v450_v5 = vsel %vm75_vm14, %v449_v3, %v430_v52 }
 0x4cd   :  { %466 = vrot.lane.b32.xlu1 %v447_v4, %s1183_s27  ;;  %468 = vrot.lane.b32.xlu0 %v450_v5, %s1183_s27 }
 0x4cf   :  { %v452_v8 = vpop.permute.xlu1 %451  ;;  %v455_v9 = vpop.permute.xlu0 %454 }
 0x4d0   :  { %v453_v12 = vsel %vm75_vm14, %v452_v8, %v431_v55  ;;  %v456_v13 = vsel %vm75_vm14, %v455_v9, %v432_v56 }
 0x4d1   :  { %470 = vrot.lane.b32.xlu1 %v453_v12, %s1183_s27  ;;  %472 = vrot.lane.b32.xlu0 %v456_v13, %s1183_s27 }
 0x4d3   :  { %v458_v14 = vpop.permute.xlu1 %457 }
 0x4d4   :  { %v459_v15 = vsel %vm75_vm14, %v458_v14, %v433_v58 }
 0x4d5   :  { %474 = vrot.lane.b32.xlu1 %v459_v15, %s1183_s27 }
 0x537   :  { %v461_v16 = vpop.permute.xlu0 %460 }
 0x538   :  { %v476_v17 = vsel %vm75_vm14, %v461_v16, %v426_v44 }
 0x539   :  { %498 = vrot.lane.b32.xlu0 %v476_v17, %s1190_s13 }
 0x53b   :  { %v463_v18 = vpop.permute.xlu1 %462  ;;  %v465_v19 = vpop.permute.xlu0 %464 }
 0x53c   :  { %v477_v24 = vsel %vm75_vm14, %v463_v18, %v427_v48  ;;  %v478_v25 = vsel %vm75_vm14, %v465_v19, %v428_v47  ;;  %v555_v48 = vsel %vm554_vm6, 1, %v1182_v7 }
 0x53d   :  { %500 = vrot.lane.b32.xlu1 %v477_v24, %s1190_s13  ;;  %502 = vrot.lane.b32.xlu0 %v478_v25, %s1190_s13  ;;  %v559_v1 = vrot.slane %v555_v48, %v1233_v10 }
 0x53f   :  { %v467_v28 = vpop.permute.xlu1 %466  ;;  %v469_v29 = vpop.permute.xlu0 %468  ;;  %vm1553_vm8 = vcmp.eq.s32.totalorder %v559_v1, 1 }
 0x540   :  { %v479_v32 = vsel %vm75_vm14, %v467_v28, %v429_v51  ;;  %v480_v33 = vsel %vm75_vm14, %v469_v29, %v430_v52 }
 0x541   :  { %504 = vrot.lane.b32.xlu1 %v479_v32, %s1190_s13  ;;  %506 = vrot.lane.b32.xlu0 %v480_v33, %s1190_s13 }
 0x543   :  { %v471_v34 = vpop.permute.xlu1 %470  ;;  %v473_v35 = vpop.permute.xlu0 %472 }
 0x544   :  { %v481_v36 = vsel %vm75_vm14, %v471_v34, %v431_v55  ;;  %v482_v37 = vsel %vm75_vm14, %v473_v35, %v432_v56 }
 0x545   :  { %508 = vrot.lane.b32.xlu1 %v481_v36, %s1190_s13  ;;  %510 = vrot.lane.b32.xlu0 %v482_v37, %s1190_s13 }
 0x547   :  { %v475_v38 = vpop.permute.xlu1 %474 }
 0x548   :  { %v483_v39 = vsel %vm75_vm14, %v475_v38, %v433_v58 }
 0x549   :  { %512 = vrot.lane.b32.xlu1 %v483_v39, %s1190_s13  ;;  %522 = vrot.lane.b32.xlu0 %v476_v17, %s1191_s14 }
 0x54d   :  { %524 = vrot.lane.b32.xlu1 %v477_v24, %s1191_s14  ;;  %526 = vrot.lane.b32.xlu0 %v478_v25, %s1191_s14 }
 0x551   :  { %528 = vrot.lane.b32.xlu1 %v479_v32, %s1191_s14  ;;  %530 = vrot.lane.b32.xlu0 %v480_v33, %s1191_s14 }
 0x555   :  { %532 = vrot.lane.b32.xlu1 %v481_v36, %s1191_s14  ;;  %534 = vrot.lane.b32.xlu0 %v482_v37, %s1191_s14 }
 0x559   :  { %536 = vrot.lane.b32.xlu1 %v483_v39, %s1191_s14 }
 0x5ab   :  { %v499_v40 = vpop.permute.xlu0 %498 }
 0x5af   :  { %v501_v43 = vpop.permute.xlu1 %500  ;;  %v503_v44 = vpop.permute.xlu0 %502 }
 0x5b3   :  { %v505_v46 = vpop.permute.xlu1 %504  ;;  %v507_v47 = vpop.permute.xlu0 %506 }
 0x5b7   :  { %v509_v50 = vpop.permute.xlu1 %508  ;;  %v511_v51 = vpop.permute.xlu0 %510 }
 0x5bb   :  { %v1551_v53 = vpop.permute.xlu1 %512  ;;  %v523_v55 = vpop.permute.xlu0 %522 }
 0x5bc   :  { %v546_v56 = vsel %vm1547_vm7, %v499_v40, %v523_v55 }
 0x5bd   :  { %v1562_v57 = vsel %vm1553_vm8, %v546_v56, %v1266_v20 }
 0x5be   :  { %v571_v62 = vrot.slane %v1562_v57, 7  ;;  %v598_v20 = vrot.slane %v1562_v57, 1 }
 0x5bf   :  { %v525_v58 = vpop.permute.xlu1 %524  ;;  %v527_v59 = vpop.permute.xlu0 %526 }
 0x5c0   :  { %v547_v60 = vsel %vm1547_vm7, %v501_v43, %v525_v58  ;;  %v548_v61 = vsel %vm1547_vm7, %v503_v44, %v527_v59 }
 0x5c1   :  { %v1573_v63 = vsel %vm1553_vm8, %v547_v60, %v1278_v22  ;;  %v1583_v3 = vsel %vm1553_vm8, %v548_v61, %v1270_v21 }
 0x5c2   :  { %v575_v0 = vrot.slane %v1573_v63, 7  ;;  %v602_v2 = vrot.slane %v1573_v63, 1  ;;  %2322 = vst [vmem:[#allocation2_spill] sm:$0xff] %v1583_v3  ;;  %v572_v21 = vrot.slane %v1583_v3, 7  ;;  %v599_v16 = vrot.slane %v1583_v3, 1 }
 0x5c3   :  { %v529_v4 = vpop.permute.xlu1 %528  ;;  %v531_v5 = vpop.permute.xlu0 %530 }
 0x5c4   :  { %v549_v22 = vsel %vm1547_vm7, %v505_v46, %v529_v4  ;;  %v550_v8 = vsel %vm1547_vm7, %v507_v47, %v531_v5  ;;  %v584_v9 = vsel %vm579_vm9, %v575_v0, %v571_v62  ;;  %v1594_v12 = vsel %vm606_vm11, %v598_v20, %v602_v2 }
 0x5c5   :  { %v1600_v13 = vsel %vm1553_vm8, %v549_v22, %v1280_v23  ;;  %v1605_v14 = vsel %vm1553_vm8, %v550_v8, %v1294_v26  ;;  %v1609_v15 = vsel %vm569_vm10, 0.0, %v584_v9  ;;  %v580_v19 = vsel %vm579_vm9, %v571_v62, %v575_v0 }
 0x5c6   :  { %2323 = vst [vmem:[#allocation3_spill] sm:$0xff] %v1600_v13  ;;  %2324 = vst [vmem:[#allocation4_spill] sm:$0xff] %v1605_v14  ;;  %v576_v17 = vrot.slane %v1600_v13, 7  ;;  %v603_v18 = vrot.slane %v1600_v13, 1  ;;  %v573_v23 = vrot.slane %v1605_v14, 7  ;;  %v600_v24 = vrot.slane %v1605_v14, 1 }
 0x5c7   :  { %v533_v25 = vpop.permute.xlu1 %532  ;;  %v535_v26 = vpop.permute.xlu0 %534  ;;  %v1620_v28 = vmin.f32 %v1609_v15, %v1594_v12  ;;  %v611_v29 = vsel %vm606_vm11, %v602_v2, %v598_v20  ;;  %v631_v6 = vmax.f32 %v1609_v15, %v1594_v12 }
 0x5c8   :  { %v551_v32 = vsel %vm1547_vm7, %v509_v50, %v533_v25  ;;  %v552_v33 = vsel %vm1547_vm7, %v511_v51, %v535_v26  ;;  %v616_v34 = vsel %vm597_vm12, 0.0, %v611_v29  ;;  %v585_v35 = vsel %vm579_vm9, %v576_v17, %v572_v21 }
 0x5c9   :  { %v1635_v36 = vsel %vm1553_vm8, %v551_v32, %v1296_v27  ;;  %v1640_v37 = vsel %vm1553_vm8, %v552_v33, %v1310_v30  ;;  %v1644_v38 = vmin.f32 %v1620_v28, %v1562_v57  ;;  %v1646_v39 = vmin.f32 %v580_v19, %v616_v34 }
 0x5ca   :  { %2325 = vst [vmem:[#allocation5_spill] sm:$0xff] %v1635_v36  ;;  %2326 = vst [vmem:[#allocation6_spill] sm:$0xff] %v1640_v37  ;;  %v577_v40 = vrot.slane %v1635_v36, 7  ;;  %v604_v41 = vrot.slane %v1635_v36, 1  ;;  %v574_v42 = vrot.slane %v1640_v37, 7  ;;  %v601_v27 = vrot.slane %v1640_v37, 1 }
 0x5cb   :  { %673 = vrot.lane.b32.xlu0 %v1644_v38, %s1183_s27  ;;  %v1656_v30 = vmin.f32 %v1646_v39, %v1573_v63  ;;  %v537_v43 = vpop.permute.xlu1 %536  ;;  %v590_v44 = vsel %vm569_vm10, 0.0, %v585_v35  ;;  %v608_v45 = vsel %vm606_vm11, %v599_v16, %v603_v18  ;;  %v581_v46 = vsel %vm579_vm9, %v572_v21, %v576_v17 }
 0x5cc   :  { %v553_v47 = vsel %vm1547_vm7, %v1551_v53, %v537_v43  ;;  %v1667_v48 = vmin.f32 %v590_v44, %v608_v45  ;;  %v612_v49 = vsel %vm606_vm11, %v603_v18, %v599_v16  ;;  %v586_v50 = vsel %vm579_vm9, %v577_v40, %v573_v23 }
 0x5cd   :  { %676 = vrot.lane.b32.xlu1 %v1656_v30, %s1183_s27  ;;  %v1678_v51 = vsel %vm1553_vm8, %v553_v47, %v1312_v31  ;;  %v618_v1 = vsel %vm597_vm12, 0.0, %v612_v49  ;;  %v592_v52 = vsel %vm569_vm10, 0.0, %v586_v50  ;;  %v609_v53 = vsel %vm606_vm11, %v600_v24, %v604_v41 }
 0x5ce   :  { %2327 = vst [vmem:[#allocation7_spill] sm:$0xff] %v1678_v51  ;;  %v578_v55 = vrot.slane %v1678_v51, 7  ;;  %v605_v56 = vrot.slane %v1678_v51, 1  ;;  %v1690_v58 = vmin.f32 %v1667_v48, %v1583_v3  ;;  %v626_v54 = vmin.f32 %v581_v46, %v618_v1 }
 0x5cf   :  { %v1692_v31 = vmin.f32 %v592_v52, %v609_v53  ;;  %v582_v59 = vsel %vm579_vm9, %v573_v23, %v577_v40  ;;  %v613_v60 = vsel %vm606_vm11, %v604_v41, %v600_v24  ;;  %v632_v11 = vmax.f32 %v580_v19, %v616_v34 }
 0x5d0   :  { %679 = vrot.lane.b32.xlu0 %v1690_v58, %s1183_s27  ;;  %v1701_v61 = vmin.f32 %v626_v54, %v1600_v13  ;;  %v620_v62 = vsel %vm597_vm12, 0.0, %v613_v60  ;;  %v587_v20 = vsel %vm579_vm9, %v578_v55, %v574_v42  ;;  %v610_v0 = vsel %vm606_vm11, %v601_v27, %v605_v56 }
 0x5d1   :  { %v1711_v2 = vmin.f32 %v1692_v31, %v1605_v14  ;;  %v628_v4 = vmin.f32 %v582_v59, %v620_v62  ;;  %v594_v5 = vsel %vm569_vm10, 0.0, %v587_v20  ;;  %v583_v22 = vsel %vm579_vm9, %v574_v42, %v578_v55 }
 0x5d2   :  { %682 = vrot.lane.b32.xlu1 %v1701_v61, %s1183_s27  ;;  %v629_v8 = vmin.f32 %v594_v5, %v610_v0  ;;  %v614_v9 = vsel %vm606_vm11, %v605_v56, %v601_v27  ;;  %v1743_v24 = vmax.f32 %v631_v6, %v1562_v57  ;;  %v633_v25 = vmax.f32 %v590_v44, %v608_v45 }
 0x5d3   :  { %v1722_v21 = vmin.f32 %v628_v4, %v1635_v36  ;;  %v622_v16 = vsel %vm597_vm12, 0.0, %v614_v9  ;;  %v1748_v26 = vmax.f32 %v632_v11, %v1573_v63  ;;  %v634_v29 = vmax.f32 %v581_v46, %v618_v1 }
 0x5d4   :  { %685 = vrot.lane.b32.xlu0 %v1711_v2, %s1183_s27  ;;  %v1729_v17 = vmin.f32 %v629_v8, %v1640_v37  ;;  %v630_v18 = vmin.f32 %v583_v22, %v622_v16  ;;  %v1753_v12 = vmax.f32 %v633_v25, %v1583_v3  ;;  %v635_v15 = vmax.f32 %v592_v52, %v609_v53 }
 0x5d5   :  { %v1758_v19 = vmax.f32 %v634_v29, %v1600_v13  ;;  %v636_v32 = vmax.f32 %v582_v59, %v620_v62  ;;  %v637_v34 = vmax.f32 %v594_v5, %v610_v0  ;;  %v638_v40 = vmax.f32 %v583_v22, %v622_v16 }
 0x5d6   :  { %688 = vrot.lane.b32.xlu1 %v1722_v21, %s1183_s27  ;;  %v1734_v23 = vmin.f32 %v630_v18, %v1678_v51  ;;  %v1763_v33 = vmax.f32 %v635_v15, %v1605_v14  ;;  %v648_v41 = vmin.f32 %v632_v11, %v1573_v63  ;;  %v647_v27 = vmin.f32 %v631_v6, %v1562_v57 }
 0x5d7   :  { %v1768_v35 = vmax.f32 %v636_v32, %v1635_v36  ;;  %v1774_v42 = vmax.f32 %v637_v34, %v1640_v37  ;;  %v1780_v43 = vmax.f32 %v638_v40, %v1678_v51  ;;  %v650_v44 = vmin.f32 %v634_v29, %v1600_v13 }
 0x5d8   :  { %691 = vrot.lane.b32.xlu0 %v1729_v17, %s1183_s27  ;;  %v1786_v45 = vmax.f32 %v1646_v39, %v648_v41  ;;  %v649_v46 = vmin.f32 %v633_v25, %v1583_v3  ;;  %v1792_v47 = vmax.f32 %v1620_v28, %v647_v27  ;;  %v652_v49 = vmin.f32 %v636_v32, %v1635_v36 }
 0x5d9   :  { %v1797_v50 = vmax.f32 %v626_v54, %v650_v44  ;;  %v651_v1 = vmin.f32 %v635_v15, %v1605_v14  ;;  %v654_v52 = vmin.f32 %v638_v40, %v1678_v51  ;;  %v653_v53 = vmin.f32 %v637_v34, %v1640_v37 }
 0x5da   :  { %694 = vrot.lane.b32.xlu1 %v1734_v23, %s1183_s27  ;;  %v1803_v39 = vmax.f32 %v1667_v48, %v649_v46  ;;  %v1808_v28 = vmax.f32 %v628_v4, %v652_v49 }
 0x5db   :  { %v1814_v55 = vmax.f32 %v1692_v31, %v651_v1  ;;  %v1818_v48 = vmax.f32 %v630_v18, %v654_v52  ;;  %v1822_v56 = vmax.f32 %v629_v8, %v653_v53 }
 0x5dc   :  { %973 = vrot.lane.b32.xlu0 %v1743_v24, %s1183_s27 }
 0x5de   :  { %976 = vrot.lane.b32.xlu1 %v1748_v26, %s1183_s27 }
 0x5e0   :  { %979 = vrot.lane.b32.xlu0 %v1753_v12, %s1183_s27 }
 0x5e2   :  { %982 = vrot.lane.b32.xlu1 %v1758_v19, %s1183_s27 }
 0x5e4   :  { %985 = vrot.lane.b32.xlu0 %v1763_v33, %s1183_s27 }
 0x5e6   :  { %988 = vrot.lane.b32.xlu1 %v1768_v35, %s1183_s27 }
 0x5e8   :  { %991 = vrot.lane.b32.xlu0 %v1774_v42, %s1183_s27 }
 0x5ea   :  { %994 = vrot.lane.b32.xlu1 %v1780_v43, %s1183_s27 }
 0x5ec   :  { %824 = vrot.lane.b32.xlu0 %v1786_v45, %s1183_s27 }
 0x5ee   :  { %821 = vrot.lane.b32.xlu1 %v1792_v47, %s1183_s27 }
 0x5f0   :  { %830 = vrot.lane.b32.xlu0 %v1797_v50, %s1183_s27 }
 0x5f2   :  { %827 = vrot.lane.b32.xlu1 %v1803_v39, %s1183_s27 }
 0x5f4   :  { %836 = vrot.lane.b32.xlu0 %v1808_v28, %s1183_s27 }
 0x5f6   :  { %833 = vrot.lane.b32.xlu1 %v1814_v55, %s1183_s27 }
 0x5f8   :  { %842 = vrot.lane.b32.xlu0 %v1818_v48, %s1183_s27 }
 0x5fa   :  { %839 = vrot.lane.b32.xlu1 %v1822_v56, %s1183_s27 }
 0x63d   :  { %v674_v54 = vpop.permute.xlu0 %673 }
 0x63e   :  { %v675_v59 = vsel %vm75_vm14, %v674_v54, %v1644_v38 }
 0x63f   :  { %v677_v60 = vpop.permute.xlu1 %676  ;;  %697 = vrot.lane.b32.xlu0 %v675_v59, %s1183_s27 }
 0x640   :  { %v678_v31 = vsel %vm75_vm14, %v677_v60, %v1656_v30 }
 0x641   :  { %699 = vrot.lane.b32.xlu1 %v678_v31, %s1183_s27 }
 0x642   :  { %v680_v62 = vpop.permute.xlu0 %679 }
 0x643   :  { %v681_v20 = vsel %vm75_vm14, %v680_v62, %v1690_v58 }
 0x644   :  { %v683_v0 = vpop.permute.xlu1 %682  ;;  %701 = vrot.lane.b32.xlu0 %v681_v20, %s1183_s27 }
 0x645   :  { %v684_v4 = vsel %vm75_vm14, %v683_v0, %v1701_v61 }
 0x646   :  { %703 = vrot.lane.b32.xlu1 %v684_v4, %s1183_s27  ;;  %v686_v5 = vpop.permute.xlu0 %685 }
 0x647   :  { %v687_v22 = vsel %vm75_vm14, %v686_v5, %v1711_v2 }
 0x648   :  { %v689_v8 = vpop.permute.xlu1 %688  ;;  %705 = vrot.lane.b32.xlu0 %v687_v22, %s1183_s27 }
 0x649   :  { %v690_v9 = vsel %vm75_vm14, %v689_v8, %v1722_v21 }
 0x64a   :  { %707 = vrot.lane.b32.xlu1 %v690_v9, %s1183_s27  ;;  %v692_v16 = vpop.permute.xlu0 %691 }
 0x64b   :  { %v693_v18 = vsel %vm75_vm14, %v692_v16, %v1729_v17 }
 0x64c   :  { %v695_v6 = vpop.permute.xlu1 %694  ;;  %709 = vrot.lane.b32.xlu0 %v693_v18, %s1183_s27 }
 0x64d   :  { %v696_v11 = vsel %vm75_vm14, %v695_v6, %v1734_v23 }
 0x64e   :  { %711 = vrot.lane.b32.xlu1 %v696_v11, %s1183_s27  ;;  %v974_v25 = vpop.permute.xlu0 %973 }
 0x64f   :  { %v975_v29 = vsel %vm75_vm14, %v974_v25, %v1743_v24 }
 0x650   :  { %v977_v15 = vpop.permute.xlu1 %976  ;;  %997 = vrot.lane.b32.xlu0 %v975_v29, %s1183_s27 }
 0x651   :  { %v978_v32 = vsel %vm75_vm14, %v977_v15, %v1748_v26 }
 0x652   :  { %999 = vrot.lane.b32.xlu1 %v978_v32, %s1183_s27  ;;  %v980_v34 = vpop.permute.xlu0 %979 }
 0x653   :  { %v981_v40 = vsel %vm75_vm14, %v980_v34, %v1753_v12 }
 0x654   :  { %v983_v41 = vpop.permute.xlu1 %982  ;;  %1001 = vrot.lane.b32.xlu0 %v981_v40, %s1183_s27 }
 0x655   :  { %v984_v27 = vsel %vm75_vm14, %v983_v41, %v1758_v19 }
 0x656   :  { %1003 = vrot.lane.b32.xlu1 %v984_v27, %s1183_s27  ;;  %v986_v44 = vpop.permute.xlu0 %985 }
 0x657   :  { %v987_v46 = vsel %vm75_vm14, %v986_v44, %v1763_v33 }
 0x658   :  { %v989_v49 = vpop.permute.xlu1 %988  ;;  %1005 = vrot.lane.b32.xlu0 %v987_v46, %s1183_s27 }
 0x659   :  { %v990_v1 = vsel %vm75_vm14, %v989_v49, %v1768_v35 }
 0x65a   :  { %1007 = vrot.lane.b32.xlu1 %v990_v1, %s1183_s27  ;;  %v992_v52 = vpop.permute.xlu0 %991 }
 0x65b   :  { %v993_v53 = vsel %vm75_vm14, %v992_v52, %v1774_v42 }
 0x65c   :  { %v995_v54 = vpop.permute.xlu1 %994  ;;  %1009 = vrot.lane.b32.xlu0 %v993_v53, %s1183_s27 }
 0x65d   :  { %v996_v59 = vsel %vm75_vm14, %v995_v54, %v1780_v43 }
 0x65e   :  { %1011 = vrot.lane.b32.xlu1 %v996_v59, %s1183_s27  ;;  %v825_v60 = vpop.permute.xlu0 %824 }
 0x65f   :  { %v826_v31 = vsel %vm75_vm14, %v825_v60, %v1786_v45 }
 0x660   :  { %v822_v62 = vpop.permute.xlu1 %821  ;;  %847 = vrot.lane.b32.xlu0 %v826_v31, %s1183_s27 }
 0x661   :  { %v823_v20 = vsel %vm75_vm14, %v822_v62, %v1792_v47 }
 0x662   :  { %845 = vrot.lane.b32.xlu1 %v823_v20, %s1183_s27  ;;  %v831_v0 = vpop.permute.xlu0 %830 }
 0x663   :  { %v832_v4 = vsel %vm75_vm14, %v831_v0, %v1797_v50 }
 0x664   :  { %v828_v5 = vpop.permute.xlu1 %827  ;;  %851 = vrot.lane.b32.xlu0 %v832_v4, %s1183_s27 }
 0x665   :  { %v829_v22 = vsel %vm75_vm14, %v828_v5, %v1803_v39 }
 0x666   :  { %849 = vrot.lane.b32.xlu1 %v829_v22, %s1183_s27  ;;  %v837_v8 = vpop.permute.xlu0 %836 }
 0x667   :  { %v838_v9 = vsel %vm75_vm14, %v837_v8, %v1808_v28 }
 0x668   :  { %v834_v16 = vpop.permute.xlu1 %833  ;;  %855 = vrot.lane.b32.xlu0 %v838_v9, %s1183_s27 }
 0x669   :  { %v835_v18 = vsel %vm75_vm14, %v834_v16, %v1814_v55 }
 0x66a   :  { %853 = vrot.lane.b32.xlu1 %v835_v18, %s1183_s27  ;;  %v843_v6 = vpop.permute.xlu0 %842 }
 0x66b   :  { %v844_v11 = vsel %vm75_vm14, %v843_v6, %v1818_v48 }
 0x66c   :  { %v840_v25 = vpop.permute.xlu1 %839  ;;  %859 = vrot.lane.b32.xlu0 %v844_v11, %s1183_s27 }
 0x66d   :  { %v841_v29 = vsel %vm75_vm14, %v840_v25, %v1822_v56 }
 0x66e   :  { %857 = vrot.lane.b32.xlu1 %v841_v29, %s1183_s27 }
 0x6b1   :  { %v698_v15 = vpop.permute.xlu0 %697 }
 0x6b2   :  { %v713_v32 = vsel %vm75_vm14, %v698_v15, %v1644_v38 }
 0x6b3   :  { %v700_v34 = vpop.permute.xlu1 %699  ;;  %735 = vrot.lane.b32.xlu0 %v713_v32, %s1184_s1 }
 0x6b4   :  { %v714_v40 = vsel %vm75_vm14, %v700_v34, %v1656_v30 }
 0x6b5   :  { %737 = vrot.lane.b32.xlu1 %v714_v40, %s1184_s1 }
 0x6b6   :  { %v702_v41 = vpop.permute.xlu0 %701 }
 0x6b7   :  { %v715_v27 = vsel %vm75_vm14, %v702_v41, %v1690_v58 }
 0x6b8   :  { %v704_v44 = vpop.permute.xlu1 %703  ;;  %739 = vrot.lane.b32.xlu0 %v715_v27, %s1184_s1 }
 0x6b9   :  { %v716_v46 = vsel %vm75_vm14, %v704_v44, %v1701_v61 }
 0x6ba   :  { %741 = vrot.lane.b32.xlu1 %v716_v46, %s1184_s1  ;;  %v706_v49 = vpop.permute.xlu0 %705 }
 0x6bb   :  { %v717_v1 = vsel %vm75_vm14, %v706_v49, %v1711_v2 }
 0x6bc   :  { %v708_v52 = vpop.permute.xlu1 %707  ;;  %743 = vrot.lane.b32.xlu0 %v717_v1, %s1184_s1 }
 0x6bd   :  { %v718_v53 = vsel %vm75_vm14, %v708_v52, %v1722_v21 }
 0x6be   :  { %745 = vrot.lane.b32.xlu1 %v718_v53, %s1184_s1  ;;  %v710_v54 = vpop.permute.xlu0 %709 }
 0x6bf   :  { %v719_v59 = vsel %vm75_vm14, %v710_v54, %v1729_v17 }
 0x6c0   :  { %v712_v60 = vpop.permute.xlu1 %711  ;;  %747 = vrot.lane.b32.xlu0 %v719_v59, %s1184_s1 }
 0x6c1   :  { %v720_v31 = vsel %vm75_vm14, %v712_v60, %v1734_v23 }
 0x6c2   :  { %749 = vrot.lane.b32.xlu1 %v720_v31, %s1184_s1  ;;  %v998_v62 = vpop.permute.xlu0 %997 }
 0x6c3   :  { %v1013_v5 = vsel %vm75_vm14, %v998_v62, %v1743_v24 }
 0x6c4   :  { %781 = vrot.lane.b32.xlu0 %v713_v32, %s1185_s8  ;;  %v1000_v20 = vpop.permute.xlu1 %999 }
 0x6c5   :  { %v1014_v22 = vsel %vm75_vm14, %v1000_v20, %v1748_v26 }
 0x6c6   :  { %783 = vrot.lane.b32.xlu1 %v714_v40, %s1185_s8  ;;  %v1002_v0 = vpop.permute.xlu0 %1001 }
 0x6c7   :  { %v1015_v9 = vsel %vm75_vm14, %v1002_v0, %v1753_v12 }
 0x6c8   :  { %785 = vrot.lane.b32.xlu0 %v715_v27, %s1185_s8  ;;  %v1004_v4 = vpop.permute.xlu1 %1003 }
 0x6c9   :  { %v1016_v18 = vsel %vm75_vm14, %v1004_v4, %v1758_v19 }
 0x6ca   :  { %787 = vrot.lane.b32.xlu1 %v716_v46, %s1185_s8  ;;  %v1006_v8 = vpop.permute.xlu0 %1005 }
 0x6cb   :  { %v1017_v6 = vsel %vm75_vm14, %v1006_v8, %v1763_v33 }
 0x6cc   :  { %789 = vrot.lane.b32.xlu0 %v717_v1, %s1185_s8  ;;  %v1008_v16 = vpop.permute.xlu1 %1007 }
 0x6cd   :  { %v1018_v25 = vsel %vm75_vm14, %v1008_v16, %v1768_v35 }
 0x6ce   :  { %791 = vrot.lane.b32.xlu1 %v718_v53, %s1185_s8  ;;  %v1010_v11 = vpop.permute.xlu0 %1009 }
 0x6cf   :  { %v1019_v15 = vsel %vm75_vm14, %v1010_v11, %v1774_v42 }
 0x6d0   :  { %793 = vrot.lane.b32.xlu0 %v719_v59, %s1185_s8  ;;  %v1012_v29 = vpop.permute.xlu1 %1011 }
 0x6d1   :  { %v1020_v32 = vsel %vm75_vm14, %v1012_v29, %v1780_v43 }
 0x6d2   :  { %795 = vrot.lane.b32.xlu1 %v720_v31, %s1185_s8  ;;  %v848_v40 = vpop.permute.xlu0 %847 }
 0x6d3   :  { %v862_v46 = vsel %vm75_vm14, %v848_v40, %v1786_v45 }
 0x6d4   :  { %1029 = vrot.lane.b32.xlu0 %v1013_v5, %s1184_s1  ;;  %v846_v34 = vpop.permute.xlu1 %845 }
 0x6d5   :  { %v861_v44 = vsel %vm75_vm14, %v846_v34, %v1792_v47 }
 0x6d6   :  { %1031 = vrot.lane.b32.xlu1 %v1014_v22, %s1184_s1  ;;  %v852_v27 = vpop.permute.xlu0 %851 }
 0x6d7   :  { %v864_v53 = vsel %vm75_vm14, %v852_v27, %v1797_v50 }
 0x6d8   :  { %1033 = vrot.lane.b32.xlu0 %v1015_v9, %s1184_s1  ;;  %v850_v41 = vpop.permute.xlu1 %849 }
 0x6d9   :  { %v863_v1 = vsel %vm75_vm14, %v850_v41, %v1803_v39 }
 0x6da   :  { %1035 = vrot.lane.b32.xlu1 %v1016_v18, %s1184_s1  ;;  %v856_v52 = vpop.permute.xlu0 %855 }
 0x6db   :  { %v866_v60 = vsel %vm75_vm14, %v856_v52, %v1808_v28 }
 0x6dc   :  { %1037 = vrot.lane.b32.xlu0 %v1017_v6, %s1184_s1  ;;  %v854_v49 = vpop.permute.xlu1 %853 }
 0x6dd   :  { %v865_v54 = vsel %vm75_vm14, %v854_v49, %v1814_v55 }
 0x6de   :  { %1039 = vrot.lane.b32.xlu1 %v1018_v25, %s1184_s1  ;;  %v860_v31 = vpop.permute.xlu0 %859 }
 0x6df   :  { %v868_v20 = vsel %vm75_vm14, %v860_v31, %v1818_v48 }
 0x6e0   :  { %1041 = vrot.lane.b32.xlu0 %v1019_v15, %s1184_s1  ;;  %v858_v59 = vpop.permute.xlu1 %857 }
 0x6e1   :  { %v867_v62 = vsel %vm75_vm14, %v858_v59, %v1822_v56 }
 0x6e2   :  { %1043 = vrot.lane.b32.xlu1 %v1020_v32, %s1184_s1 }
 0x6e4   :  { %1069 = vrot.lane.b32.xlu0 %v1013_v5, %s1185_s8 }
 0x6e6   :  { %1071 = vrot.lane.b32.xlu1 %v1014_v22, %s1185_s8 }
 0x6e8   :  { %1073 = vrot.lane.b32.xlu0 %v1015_v9, %s1185_s8 }
 0x6ea   :  { %1075 = vrot.lane.b32.xlu1 %v1016_v18, %s1185_s8  ;;  %v1181_v18 = vld [vmem:[%s2297_s0] sm:$0x1] }
 0x6eb   :  { %vm671_vm13 = vcmp.eq.s32.totalorder %v1181_v18, 0  ;;  %vm672_vm14 = vcmp.eq.s32.totalorder %v1181_v18, 15 }
 0x6ec   :  { %1077 = vrot.lane.b32.xlu0 %v1017_v6, %s1185_s8  ;;  %v775_v34 = vsel %vm672_vm14, 1, %v1182_v7 }
 0x6ed   :  { %v779_v27 = vrot.slane %v775_v34, %v1233_v10 }
 0x6ee   :  { %1079 = vrot.lane.b32.xlu1 %v1018_v25, %s1185_s8  ;;  %v721_v25 = vsel %vm671_vm13, 1, %v1182_v7 }
 0x6ef   :  { %vm2023_vm0 = vcmp.eq.s32.totalorder %v779_v27, 1 }
 0x6f0   :  { %877 = vrot.lane.b32.xlu0 %v861_v44, %s1184_s1 }
 0x6f2   :  { %879 = vrot.lane.b32.xlu1 %v862_v46, %s1184_s1 }
 0x6f4   :  { %881 = vrot.lane.b32.xlu0 %v863_v1, %s1184_s1 }
 0x6f6   :  { %883 = vrot.lane.b32.xlu1 %v864_v53, %s1184_s1 }
 0x6f8   :  { %885 = vrot.lane.b32.xlu0 %v865_v54, %s1184_s1 }
 0x6fa   :  { %887 = vrot.lane.b32.xlu1 %v866_v60, %s1184_s1 }
 0x6fc   :  { %889 = vrot.lane.b32.xlu0 %v867_v62, %s1184_s1 }
 0x6fe   :  { %891 = vrot.lane.b32.xlu1 %v868_v20, %s1184_s1 }
 0x700   :  { %909 = vrot.lane.b32.xlu0 %v861_v44, %s1185_s8 }
 0x702   :  { %911 = vrot.lane.b32.xlu1 %v862_v46, %s1185_s8 }
 0x704   :  { %913 = vrot.lane.b32.xlu0 %v863_v1, %s1185_s8 }
 0x706   :  { %915 = vrot.lane.b32.xlu1 %v864_v53, %s1185_s8 }
 0x708   :  { %917 = vrot.lane.b32.xlu0 %v865_v54, %s1185_s8 }
 0x70a   :  { %919 = vrot.lane.b32.xlu1 %v866_v60, %s1185_s8 }
 0x70c   :  { %921 = vrot.lane.b32.xlu0 %v867_v62, %s1185_s8 }
 0x70e   :  { %923 = vrot.lane.b32.xlu1 %v868_v20, %s1185_s8 }
 0x710   :  { %1081 = vrot.lane.b32.xlu0 %v1019_v15, %s1185_s8  ;;  %v725_v15 = vrot.slane %v721_v25, %v1233_v10 }
 0x712   :  { %1083 = vrot.lane.b32.xlu1 %v1020_v32, %s1185_s8  ;;  %vm2012_vm15 = vcmp.eq.s32.totalorder %v725_v15, 1 }
 0x725   :  { %v736_v0 = vpop.permute.xlu0 %735 }
 0x726   :  { %v759_v36 = vsel %vm2012_vm15, 0.0, %v736_v0 }
 0x727   :  { %v738_v4 = vpop.permute.xlu1 %737  ;;  %v767_v0 = vmax.f32 %v759_v36, %v1644_v38 }
 0x728   :  { %v760_v37 = vsel %vm2012_vm15, 0.0, %v738_v4 }
 0x729   :  { %v768_v4 = vmax.f32 %v760_v37, %v1656_v30 }
 0x72a   :  { %v740_v5 = vpop.permute.xlu0 %739 }
 0x72b   :  { %v761_v14 = vsel %vm2012_vm15, 0.0, %v740_v5 }
 0x72c   :  { %v1994_v22 = vpop.permute.xlu1 %741  ;;  %v769_v3 = vmax.f32 %v761_v14, %v1690_v58 }
 0x72e   :  { %v1996_v8 = vpop.permute.xlu0 %743 }
 0x730   :  { %v1998_v9 = vpop.permute.xlu1 %745 }
 0x731   :  { %v764_v5 = vsel %vm2012_vm15, 0.0, %v1998_v9 }
 0x732   :  { %v748_v16 = vpop.permute.xlu0 %747  ;;  %v772_v58 = vmax.f32 %v764_v5, %v1722_v21 }
 0x733   :  { %v765_v46 = vsel %vm2012_vm15, 0.0, %v748_v16 }
 0x734   :  { %v750_v6 = vpop.permute.xlu1 %749  ;;  %v773_v53 = vmax.f32 %v765_v46, %v1729_v17 }
 0x735   :  { %v766_v1 = vsel %vm2012_vm15, 0.0, %v750_v6 }
 0x736   :  { %v2003_v11 = vpop.permute.xlu0 %781  ;;  %v774_v60 = vmax.f32 %v766_v1, %v1734_v23 }
 0x738   :  { %v2006_v29 = vpop.permute.xlu1 %783 }
 0x73a   :  { %v2009_v32 = vpop.permute.xlu0 %785 }
 0x73b   :  { %v807_v36 = vsel %vm2023_vm0, 0.0, %v2009_v32 }
 0x73c   :  { %v788_v40 = vpop.permute.xlu1 %787 }
 0x73e   :  { %v2017_v44 = vpop.permute.xlu0 %789 }
 0x73f   :  { %v809_v14 = vsel %vm2023_vm0, 0.0, %v2017_v44 }
 0x740   :  { %v792_v49 = vpop.permute.xlu1 %791 }
 0x742   :  { %v794_v54 = vpop.permute.xlu0 %793 }
 0x743   :  { %v811_v59 = vsel %vm2023_vm0, 0.0, %v794_v54 }
 0x744   :  { %v796_v31 = vpop.permute.xlu1 %795  ;;  %v2031_v62 = vmax.f32 %v773_v53, %v811_v59  ;;  %v25_v59 = vld [vmem:[%s2297_s0 + $0x6] sm:$0x1] }
 0x745   :  { %v812_v20 = vsel %vm2023_vm0, 0.0, %v796_v31  ;;  %vm1141_vm1 = vcmp.gt.s32.totalorder %v25_v59, 0  ;;  %v763_v59 = vsel %vm2012_vm15, 0.0, %v1996_v8  ;;  %v806_v8 = vsel %vm2023_vm0, 0.0, %v2006_v29 }
 0x746   :  { %2332 = vst [vmem:[#allocation8_spill] sm:$0xff] %v2031_v62  ;;  %v2035_v16 = vmax.f32 %v774_v60, %v812_v20  ;;  %v1030_v18 = vpop.permute.xlu0 %1029  ;;  %v2055_v51 = vsel %vm1141_vm1, 1, %v1182_v7  ;;  %v762_v62 = vsel %vm2012_vm15, 0.0, %v1994_v22  ;;  %v805_v22 = vsel %vm2023_vm0, 0.0, %v2003_v11 }
 0x747   :  { %v1146_v13 = vrot.slane %v2055_v51, %v1233_v10  ;;  %v808_v10 = vsel %vm2023_vm0, 0.0, %v788_v40  ;;  %v770_v38 = vmax.f32 %v762_v62, %v1701_v61  ;;  %v771_v30 = vmax.f32 %v763_v59, %v1711_v2 }
 0x748   :  { %2333 = vst [vmem:[#allocation9_spill] sm:$0xff] %v2035_v16  ;;  %v1032_v6 = vpop.permute.xlu1 %1031  ;;  %v810_v51 = vsel %vm2023_vm0, 0.0, %v792_v49  ;;  %v2096_v9 = vmax.f32 %v767_v0, %v805_v22  ;;  %v1053_v29 = vsel %vm2012_vm15, 0.0, %v1030_v18  ;;  %v2102_v32 = vmax.f32 %v768_v4, %v806_v8 }
 0x749   :  { %v1054_v11 = vsel %vm2012_vm15, 0.0, %v1032_v6  ;;  %v2104_v2 = vmax.f32 %v770_v38, %v808_v10  ;;  %v2106_v40 = vmax.f32 %v769_v3, %v807_v36  ;;  %v2110_v49 = vmax.f32 %v772_v58, %v810_v51 }
 0x74a   :  { %v1034_v25 = vpop.permute.xlu0 %1033  ;;  %v2112_v21 = vmax.f32 %v771_v30, %v809_v14  ;;  %v1062_v59 = vmin.f32 %v1054_v11, %v1748_v26  ;;  %v1061_v4 = vmin.f32 %v1053_v29, %v1743_v24  ;;  %vm2169_vm2 = vcmp.eq.s32.totalorder %v1146_v13, 1 }
 0x74b   :  { %v1055_v44 = vsel %vm2012_vm15, 0.0, %v1034_v25 }
 0x74c   :  { %v1036_v15 = vpop.permute.xlu1 %1035  ;;  %v1063_v0 = vmin.f32 %v1055_v44, %v1753_v12 }
 0x74d   :  { %v1056_v62 = vsel %vm2012_vm15, 0.0, %v1036_v15 }
 0x74e   :  { %v1038_v34 = vpop.permute.xlu0 %1037 }
 0x74f   :  { %v1057_v18 = vsel %vm2012_vm15, 0.0, %v1038_v34 }
 0x750   :  { %v1040_v17 = vpop.permute.xlu1 %1039  ;;  %v1065_v5 = vmin.f32 %v1057_v18, %v1763_v33 }
 0x751   :  { %v1058_v3 = vsel %vm2012_vm15, 0.0, %v1040_v17  ;;  %v1064_v17 = vmin.f32 %v1056_v62, %v1758_v19 }
 0x752   :  { %v1042_v27 = vpop.permute.xlu0 %1041 }
 0x753   :  { %v1059_v25 = vsel %vm2012_vm15, 0.0, %v1042_v27 }
 0x754   :  { %v2037_v46 = vpop.permute.xlu1 %1043 }
 0x755   :  { %v1060_v15 = vsel %vm2012_vm15, 0.0, %v2037_v46  ;;  %v1066_v46 = vmin.f32 %v1058_v3, %v1768_v35 }
 0x756   :  { %v2039_v54 = vpop.permute.xlu0 %1069  ;;  %v2152_v22 = vmin.f32 %v1060_v15, %v1780_v43 }
 0x757   :  { %v1093_v24 = vsel %vm2023_vm0, 0.0, %v2039_v54 }
 0x758   :  { %v2041_v23 = vpop.permute.xlu1 %1071  ;;  %v1101_v8 = vmin.f32 %v1061_v4, %v1093_v24 }
 0x759   :  { %v1094_v34 = vsel %vm2023_vm0, 0.0, %v2041_v23  ;;  %v2143_v23 = vmin.f32 %v1059_v25, %v1774_v42 }
 0x75a   :  { %v2043_v1 = vpop.permute.xlu0 %1073 }
 0x75b   :  { %v1095_v12 = vsel %vm2023_vm0, 0.0, %v2043_v1  ;;  %v1102_v1 = vmin.f32 %v1062_v59, %v1094_v34 }
 0x75c   :  { %v2045_v53 = vpop.permute.xlu1 %1075 }
 0x75d   :  { %v1096_v54 = vsel %vm2023_vm0, 0.0, %v2045_v53 }
 0x75e   :  { %v2050_v60 = vpop.permute.xlu0 %1077  ;;  %v2164_v36 = vmin.f32 %v1064_v17, %v1096_v54 }
 0x75f   :  { %v1097_v19 = vsel %vm2023_vm0, 0.0, %v2050_v60 }
 0x760   :  { %v2052_v31 = vpop.permute.xlu1 %1079  ;;  %v2166_v43 = vmin.f32 %v1065_v5, %v1097_v19 }
 0x761   :  { %v1098_v42 = vsel %vm2023_vm0, 0.0, %v2052_v31 }
 0x762   :  { %v878_v20 = vpop.permute.xlu0 %877  ;;  %v2180_v11 = vmin.f32 %v1066_v46, %v1098_v42 }
 0x763   :  { %v901_v27 = vsel %vm2012_vm15, 0.0, %v878_v20  ;;  %v2156_v20 = vmin.f32 %v1063_v0, %v1095_v12 }
 0x764   :  { %v880_v16 = vpop.permute.xlu1 %879  ;;  %v949_v53 = vmax.f32 %v901_v27, %v1792_v47  ;;  %v941_v38 = vmin.f32 %v901_v27, %v1792_v47 }
 0x765   :  { %v902_v35 = vsel %vm2012_vm15, 0.0, %v880_v16 }
 0x766   :  { %v882_v7 = vpop.permute.xlu0 %881  ;;  %v950_v31 = vmax.f32 %v902_v35, %v1786_v45  ;;  %v942_v13 = vmin.f32 %v902_v35, %v1786_v45 }
 0x767   :  { %v903_v60 = vsel %vm2012_vm15, 0.0, %v882_v7 }
 0x768   :  { %v884_v37 = vpop.permute.xlu1 %883  ;;  %v943_v47 = vmin.f32 %v903_v60, %v1803_v39  ;;  %v951_v44 = vmax.f32 %v903_v60, %v1803_v39 }
 0x769   :  { %v904_v51 = vsel %vm2012_vm15, 0.0, %v884_v37 }
 0x76a   :  { %v886_v61 = vpop.permute.xlu0 %885  ;;  %v944_v59 = vmin.f32 %v904_v51, %v1797_v50  ;;  %v952_v4 = vmax.f32 %v904_v51, %v1797_v50 }
 0x76b   :  { %v905_v7 = vsel %vm2012_vm15, 0.0, %v886_v61 }
 0x76c   :  { %v888_v6 = vpop.permute.xlu1 %887  ;;  %v945_v3 = vmin.f32 %v905_v7, %v1814_v55  ;;  %v953_v17 = vmax.f32 %v905_v7, %v1814_v55 }
 0x76d   :  { %v906_v37 = vsel %vm2012_vm15, 0.0, %v888_v6 }
 0x76e   :  { %v890_v26 = vpop.permute.xlu0 %889  ;;  %v946_v34 = vmin.f32 %v906_v37, %v1808_v28  ;;  %v954_v24 = vmax.f32 %v906_v37, %v1808_v28 }
 0x76f   :  { %v907_v25 = vsel %vm2012_vm15, 0.0, %v890_v26 }
 0x770   :  { %v892_v33 = vpop.permute.xlu1 %891  ;;  %v947_v54 = vmin.f32 %v907_v25, %v1822_v56 }
 0x772   :  { %v910_v10 = vpop.permute.xlu0 %909 }
 0x773   :  { %v933_v30 = vsel %vm2023_vm0, 0.0, %v910_v10 }
 0x774   :  { %v912_v14 = vpop.permute.xlu1 %911  ;;  %v957_v58 = vmin.f32 %v949_v53, %v933_v30 }
 0x775   :  { %v934_v29 = vsel %vm2023_vm0, 0.0, %v912_v14 }
 0x776   :  { %v958_v62 = vmin.f32 %v950_v31, %v934_v29  ;;  %v965_v18 = vmax.f32 %v941_v38, %v957_v58  ;;  %v914_v61 = vpop.permute.xlu0 %913  ;;  %v908_v38 = vsel %vm2012_vm15, 0.0, %v892_v33 }
 0x777   :  { %v935_v45 = vsel %vm2023_vm0, 0.0, %v914_v61  ;;  %v948_v29 = vmin.f32 %v908_v38, %v1818_v48  ;;  %v2336_v61 = vld [vmem:[#allocation2_spill] sm:$0xff] }
 0x778   :  { %v966_v0 = vmax.f32 %v942_v13, %v958_v62  ;;  %v1117_v39 = vmax.f32 %v2096_v9, %v965_v18  ;;  %v916_v15 = vpop.permute.xlu1 %915  ;;  %v959_v6 = vmin.f32 %v951_v44, %v935_v45  ;;  %v1109_v12 = vmin.f32 %v2096_v9, %v965_v18 }
 0x779   :  { %v936_v50 = vsel %vm2023_vm0, 0.0, %v916_v15  ;;  %v955_v9 = vmax.f32 %v907_v25, %v1822_v56  ;;  %v956_v62 = vmax.f32 %v908_v38, %v1818_v48  ;;  %v2337_v25 = vld [vmem:[#allocation3_spill] sm:$0xff] }
 0x77a   :  { %v1118_v5 = vmax.f32 %v2102_v32, %v966_v0  ;;  %v1125_v27 = vmin.f32 %v1117_v39, %v1101_v8  ;;  %v960_v26 = vmin.f32 %v952_v4, %v936_v50  ;;  %v918_v46 = vpop.permute.xlu0 %917  ;;  %v1110_v19 = vmin.f32 %v2102_v32, %v966_v0 }
 0x77b   :  { %v967_v35 = vmax.f32 %v943_v47, %v959_v6  ;;  %v937_v28 = vsel %vm2023_vm0, 0.0, %v918_v46  ;;  %v2338_v6 = vld [vmem:[#allocation8_spill] sm:$0xff]  ;;  %v2340_v46 = vld [vmem:[#allocation9_spill] sm:$0xff] }
 0x77c   :  { %v1126_v42 = vmin.f32 %v1118_v5, %v1102_v1  ;;  %v1133_v55 = vmax.f32 %v1109_v12, %v1125_v27  ;;  %v968_v53 = vmax.f32 %v944_v59, %v960_v26  ;;  %v920_v60 = vpop.permute.xlu1 %919  ;;  %v961_v10 = vmin.f32 %v953_v17, %v937_v28  ;;  %v2339_v27 = vld [vmem:[#allocation4_spill] sm:$0xff] }
 0x77d   :  { %v1119_v8 = vmax.f32 %v2106_v40, %v967_v35  ;;  %v938_v30 = vsel %vm2023_vm0, 0.0, %v920_v60  ;;  %v1111_v51 = vmin.f32 %v2106_v40, %v967_v35  ;;  %v2343_v60 = vld [vmem:[#allocation7_spill] sm:$0xff] }
 0x77e   :  { %v1134_v32 = vmax.f32 %v1110_v19, %v1126_v42  ;;  %v1148_v31 = vsel %vm2169_vm2, %v1133_v55, %v1562_v57  ;;  %v1120_v1 = vmax.f32 %v2104_v2, %v968_v53  ;;  %v922_v7 = vpop.permute.xlu0 %921  ;;  %v962_v41 = vmin.f32 %v954_v24, %v938_v30  ;;  %v2341_v19 = vld [vmem:[#allocation5_spill] sm:$0xff]  ;;  %v2342_v55 = vld [vmem:[#allocation6_spill] sm:$0xff] }
 0x77f   :  { %1157 = vst.msk [vmem:[%s2299_s2] sm:$0xff] %vm1156_vm3, %v1148_v31  ;;  %v1127_v56 = vmin.f32 %v1119_v8, %v2156_v20  ;;  %v969_v33 = vmax.f32 %v945_v3, %v961_v10  ;;  %v939_v14 = vsel %vm2023_vm0, 0.0, %v922_v7  ;;  %v1112_v58 = vmin.f32 %v2104_v2, %v968_v53 }
 0x780   :  { %v1149_v57 = vsel %vm2169_vm2, %v1134_v32, %v1573_v63  ;;  %v1128_v40 = vmin.f32 %v1120_v1, %v2164_v36  ;;  %v924_v13 = vpop.permute.xlu1 %923  ;;  %v963_v47 = vmin.f32 %v955_v9, %v939_v14  ;;  %v970_v44 = vmax.f32 %v946_v34, %v962_v41 }
 0x781   :  { %1158 = vst.msk [vmem:[%s2299_s2 + $0x8] sm:$0xff] %vm1156_vm3, %v1149_v57  ;;  %v1135_v20 = vmax.f32 %v1111_v51, %v1127_v56  ;;  %v1121_v37 = vmax.f32 %v2112_v21, %v969_v33  ;;  %v940_v2 = vsel %vm2023_vm0, 0.0, %v924_v13  ;;  %v1113_v3 = vmin.f32 %v2112_v21, %v969_v33 }
 0x782   :  { %v1136_v63 = vmax.f32 %v1112_v58, %v1128_v40  ;;  %v971_v36 = vmax.f32 %v947_v54, %v963_v47  ;;  %v1082_v18 = vpop.permute.xlu0 %1081  ;;  %v1122_v4 = vmax.f32 %v2110_v49, %v970_v44  ;;  %v1114_v0 = vmin.f32 %v2110_v49, %v970_v44 }
 0x783   :  { %v1150_v59 = vsel %vm2169_vm2, %v1135_v20, %v2336_v61  ;;  %v1129_v45 = vmin.f32 %v1121_v37, %v2166_v43  ;;  %v964_v39 = vmin.f32 %v956_v62, %v940_v2  ;;  %v1099_v17 = vsel %vm2023_vm0, 0.0, %v1082_v18 }
 0x784   :  { %v1151_v48 = vsel %vm2169_vm2, %v1136_v63, %v2337_v25  ;;  %1159 = vst.msk [vmem:[%s2299_s2 + $0x10] sm:$0xff] %vm1156_vm3, %v1150_v59  ;;  %v1084_v15 = vpop.permute.xlu1 %1083  ;;  %v1123_v34 = vmax.f32 %v2338_v6, %v971_v36  ;;  %v1130_v21 = vmin.f32 %v1122_v4, %v2180_v11  ;;  %v1107_v5 = vmin.f32 %v2143_v23, %v1099_v17 }
 0x785   :  { %1160 = vst.msk [vmem:[%s2299_s2 + $0x18] sm:$0xff] %vm1156_vm3, %v1151_v48  ;;  %v1137_v43 = vmax.f32 %v1113_v3, %v1129_v45  ;;  %v1100_v24 = vsel %vm2023_vm0, 0.0, %v1084_v15  ;;  %v972_v50 = vmax.f32 %v948_v29, %v964_v39  ;;  %v1115_v11 = vmin.f32 %v2338_v6, %v971_v36 }
 0x786   :  { %v1108_v49 = vmin.f32 %v2152_v22, %v1100_v24  ;;  %v1138_v12 = vmax.f32 %v1114_v0, %v1130_v21  ;;  %v1131_v54 = vmin.f32 %v1123_v34, %v1107_v5 }
 0x787   :  { %v1152_v26 = vsel %vm2169_vm2, %v1137_v43, %v2339_v27  ;;  %v1124_v52 = vmax.f32 %v2340_v46, %v972_v50  ;;  %v1116_v23 = vmin.f32 %v2340_v46, %v972_v50 }
 0x788   :  { %1161 = vst.msk [vmem:[%s2299_s2 + $0x20] sm:$0xff] %vm1156_vm3, %v1152_v26  ;;  %v1153_v22 = vsel %vm2169_vm2, %v1138_v12, %v2341_v19  ;;  %v1139_v28 = vmax.f32 %v1115_v11, %v1131_v54 }
 0x789   :  { %1162 = vst.msk [vmem:[%s2299_s2 + $0x28] sm:$0xff] %vm1156_vm3, %v1153_v22  ;;  %v1132_v35 = vmin.f32 %v1124_v52, %v1108_v49 }
 0x78a   :  { %v1154_v53 = vsel %vm2169_vm2, %v1139_v28, %v2342_v55 }
 0x78b   :  { %v1140_v42 = vmax.f32 %v1116_v23, %v1132_v35  ;;  %1163 = vst.msk [vmem:[%s2299_s2 + $0x30] sm:$0xff] %vm1156_vm3, %v1154_v53 }
 0x78d   :  { %v1155_v10 = vsel %vm2169_vm2, %v1140_v42, %v2343_v60 }
 0x78e   :  { %1164 = vst.msk [vmem:[%s2299_s2 + $0x38] sm:$0xff] %vm1156_vm3, %v1155_v10 }

</bundles_post_ra>
